<compile_context>
chip_gen: v5e
topology: v5e:2x2
jax: 0.10.0
libtpu: 0.0.40
codegen_flags: <defaults>
</compile_context>

<pallas_src>
import jax
import jax.numpy as jnp
import numpy as np
from jax.experimental import pallas as pl
from jax.experimental.pallas import tpu as pltpu

NUM_NODES_SINGLE_TEAM = 8
IN_CHANNELS = NUM_NODES_SINGLE_TEAM * 2        # 16 (const.NUM_NODES_SINGLE_TEAM * 2)
HIDDEN = 32                                    # hidden_channels (small demo size; HEADS*HIDDEN==128)
HEADS = 4
NUM_CLASSES = 3
NODES_PER_GRAPH = 2 * NUM_NODES_SINGLE_TEAM    # 16 nodes per game graph
LEAKY_SLOPE = 0.2

LANE = 128                                     # TPU lane width
NODES_PER_BLOCK = 128                          # one grid step = 128 nodes (do NOT grow; review)
GRAPHS_PER_BLOCK = NODES_PER_BLOCK // NODES_PER_GRAPH   # 8 graphs / block
NUM_BLOCKS = 8                                 # >=4 so each v7x TC pipelines >1 step
NUM_GRAPHS = NUM_BLOCKS * GRAPHS_PER_BLOCK     # 64 graphs per call
N = NUM_GRAPHS * NODES_PER_GRAPH               # 1024 nodes total

assert HEADS * HIDDEN == LANE
assert NODES_PER_BLOCK % NODES_PER_GRAPH == 0  # graphs never span a 128-node block


# ---------------------------------------------------------------------------
# Packed parameter buffer layout. All slots padded to 128 lanes, row offsets
# aligned to 8 sublanes. Static row slices of the single VMEM ref are free.
# ---------------------------------------------------------------------------
def _r8(n):
    return ((n + 7) // 8) * 8

R_W1    = 0                            # [16, 128]        gat1 lin weight
R_B1    = R_W1 + _r8(IN_CHANNELS)      # [1, 128]         gat1 bias
R_A1    = R_B1 + 8                     # [128, 128] cols 0:4 a_src/head, 4:8 a_dst/head
R_W2    = R_A1 + LANE                  # [128, 128] cols 0:32  gat2 lin weight
R_B2    = R_W2 + LANE                  # [1, 128]  cols 0:32   gat2 bias
R_A2    = R_B2 + 8                     # [128, 128] col0 a_src, col1 a_dst
R_FC1W  = R_A2 + LANE                  # [128, 128] top-left 32x32  fc1 weight
R_FC1B  = R_FC1W + LANE                # [1, 128]  cols 0:32        fc1 bias
R_FC2W  = R_FC1B + 8                   # [128, 128] top-left 32x3   fc2 weight
R_FC2B  = R_FC2W + LANE                # [1, 128]  cols 0:3         fc2 bias
R_HMASK = R_FC2B + 8                   # [4, 128] head -> column selector
R_BLK   = R_HMASK + 8                  # [128, 128] block-diag ones (adjacency + segment-sum matrix)
R_LSEL  = R_BLK + NODES_PER_BLOCK      # [16, 128] lane-within-group selector (c%16 == row)
R_PSEL  = R_LSEL + _r8(NODES_PER_GRAPH)  # [8, 128]  mean-pool matrix (1/16 per graph)
P_ROWS  = R_PSEL + 8                   # 848 rows total


def _leaky_relu(v, slope=LEAKY_SLOPE):
    return jnp.maximum(v, slope * v)


def _elu(v):
    # F.elu with alpha=1
    return jnp.where(v > 0, v, jnp.exp(jnp.minimum(v, 0.0)) - 1.0)


# ---------------------------------------------------------------------------
# Kernel: one 128-node / 8-graph block per grid step.
# ---------------------------------------------------------------------------
def outcome_kernel(x_ref, prm_ref, out_ref):
    f32 = jnp.float32
    x = x_ref[...]                                            # [128, 16]

    blk = prm_ref[R_BLK:R_BLK + NODES_PER_BLOCK, :]           # [128,128] block-diag ones
    lsel = prm_ref[R_LSEL:R_LSEL + NODES_PER_GRAPH, :]        # [16,128]  (c % 16 == row)
    hmask = prm_ref[R_HMASK:R_HMASK + 8, :]                   # [8,128]; rows 0..3 used

    def packed_attention(a_src, a_dst):
        # a_src/a_dst: [1, 128] per-node alpha rows (node index on lanes).
        # Packed scores: rows = target-node-local index il (16 sublanes),
        # lanes = (graph g, source-node-local jl) = 128 lanes — every entry valid.
        # dst_p[il, g*16+jl] = a_dst[g*16+il]  via mask-then-segment-broadcast matmul.
        dst_p = jnp.dot(a_dst * lsel, blk, preferred_element_type=f32)     # [16,128]
        e = _leaky_relu(dst_p + a_src)                                     # [16,128]
        p = jnp.exp(jnp.minimum(e, 30.0))   # no row-max subtraction (scores bounded)
        s = jnp.dot(p, blk, preferred_element_type=f32)     # per-graph sums, broadcast back
        attn = p * pl.reciprocal(s, approx=True)                            # [16,128]
        # Expand back to the dense block-diagonal [128,128] attention only for
        # the apply matmul: sublane-tile 8x + one mask multiply.
        return jnp.concatenate([attn] * GRAPHS_PER_BLOCK, axis=0) * blk     # [128,128]

    # ---------------- GAT layer 1 (4 heads) ----------------
    w1 = prm_ref[R_W1:R_W1 + IN_CHANNELS, :]                                # [16,128]
    h1 = jnp.dot(x, w1, preferred_element_type=f32)                         # [128,128]
    A1 = prm_ref[R_A1:R_A1 + LANE, :]
    al = jnp.dot(h1, A1, preferred_element_type=f32)                        # [128,128]
    al_t = al[:, :2 * HEADS].T             # [8,128]; rows 0:4 alpha_src, 4:8 alpha_dst

    acc1 = None
    for h in range(HEADS):
        dense = packed_attention(al_t[h:h + 1, :], al_t[HEADS + h:HEADS + h + 1, :])
        # head h only contributes to its own 32 output columns (hmask zeroes the rest)
        term = jnp.dot(dense, h1 * hmask[h:h + 1, :], preferred_element_type=f32)
        acc1 = term if acc1 is None else acc1 + term
    b1 = prm_ref[R_B1:R_B1 + 1, :]
    g1 = _elu(acc1 + b1)                                                     # [128,128]

    # ---------------- GAT layer 2 (1 head, 128-lane padded space) ----------------
    w2 = prm_ref[R_W2:R_W2 + LANE, :]                                        # cols 32+ are 0
    h2 = jnp.dot(g1, w2, preferred_element_type=f32)                         # [128,128]
    A2 = prm_ref[R_A2:R_A2 + LANE, :]
    al2 = jnp.dot(h2, A2, preferred_element_type=f32)                        # col0 src, col1 dst
    al2_t = al2[:, :2].T                                                     # [2,128]
    dense2 = packed_attention(al2_t[0:1, :], al2_t[1:2, :])                  # [128,128]
    b2 = prm_ref[R_B2:R_B2 + 1, :]
    g2 = _elu(jnp.dot(dense2, h2, preferred_element_type=f32) + b2)          # [128,128]

    # ---------------- global mean pool + fc1(ReLU) + fc2 ----------------
    psel = prm_ref[R_PSEL:R_PSEL + GRAPHS_PER_BLOCK, :]                      # [8,128]
    pooled = jnp.dot(psel, g2, preferred_element_type=f32)                   # [8,128]
    fc1w = prm_ref[R_FC1W:R_FC1W + LANE, :]
    fc1b = prm_ref[R_FC1B:R_FC1B + 1, :]
    f1 = jnp.maximum(
        jnp.dot(pooled, fc1w, preferred_element_type=f32) + fc1b, 0.0)
    fc2w = prm_ref[R_FC2W:R_FC2W + LANE, :]
    fc2b = prm_ref[R_FC2B:R_FC2B + 1, :]
    # lane-dense [8, 128] store; first NUM_CLASSES columns are the logits
    out_ref[...] = jnp.dot(f1, fc2w, preferred_element_type=f32) + fc2b


def game_outcome_predictor_v2(x, packed_params):
    out_padded = pl.pallas_call(
        outcome_kernel,
        out_shape=jax.ShapeDtypeStruct((NUM_GRAPHS, LANE), jnp.float32),
        grid=(NUM_BLOCKS,),
        in_specs=[
            pl.BlockSpec((NODES_PER_BLOCK, IN_CHANNELS), lambda g: (g, 0)),
            # constant index_map -> no per-step re-DMA of the resident params
            pl.BlockSpec((P_ROWS, LANE), lambda g: (0, 0)),
        ],
        out_specs=pl.BlockSpec((GRAPHS_PER_BLOCK, LANE), lambda g: (g, 0)),
        compiler_params=pltpu.CompilerParams(
            dimension_semantics=("parallel",)),   # shards blocks across v7x TCs
    )(x, packed_params)
    return out_padded[:, :NUM_CLASSES]


# ---------------------------------------------------------------------------
# Host-side packing: 12 parameter tensors + the static graph-structure
# matrices (block-diag ones / lane selector / mean pool) into one [848, 128].
# ---------------------------------------------------------------------------
def pack_params(p):
    buf = np.zeros((P_ROWS, LANE), np.float32)

    def put(r0, a):
        a = np.asarray(a, np.float32)
        buf[r0:r0 + a.shape[0], :a.shape[1]] = a

    put(R_W1, p["w1"])                 # [16, 128]
    put(R_B1, p["b1"])                 # [1, 128]
    # A1[hd*HIDDEN + d, hd] = a_src1[hd, d]; A1[hd*HIDDEN + d, HEADS+hd] = a_dst1[hd, d]
    A1 = np.zeros((HEADS * HIDDEN, 2 * HEADS), np.float32)
    asrc1 = np.asarray(p["asrc1"], np.float32)
    adst1 = np.asarray(p["adst1"], np.float32)
    for hd in range(HEADS):
        A1[hd * HIDDEN:(hd + 1) * HIDDEN, hd] = asrc1[hd]
        A1[hd * HIDDEN:(hd + 1) * HIDDEN, HEADS + hd] = adst1[hd]
    put(R_A1, A1)
    put(R_W2, p["w2"])                 # [128, 32] -> cols 0:32
    put(R_B2, p["b2"])                 # [1, 32]
    A2 = np.zeros((HEADS * HIDDEN, 2), np.float32)
    A2[:HIDDEN, 0] = np.asarray(p["asrc2"], np.float32)[0]
    A2[:HIDDEN, 1] = np.asarray(p["adst2"], np.float32)[0]
    put(R_A2, A2)
    put(R_FC1W, p["fc1w"])             # [32, 32]
    put(R_FC1B, p["fc1b"])             # [1, 32]
    put(R_FC2W, p["fc2w"])             # [32, 3]
    put(R_FC2B, p["fc2b"])             # [1, 3]
    hm = np.zeros((HEADS, LANE), np.float32)
    for hd in range(HEADS):
        hm[hd, hd * HIDDEN:(hd + 1) * HIDDEN] = 1.0
    put(R_HMASK, hm)

    # Static per-block graph structure (fully-connected 16-node graphs,
    # contiguous and block-aligned, self-loops included).
    grp = np.arange(NODES_PER_BLOCK) // NODES_PER_GRAPH
    blk = (grp[:, None] == grp[None, :]).astype(np.float32)            # [128,128]
    put(R_BLK, blk)
    lsel = (np.arange(LANE)[None, :] % NODES_PER_GRAPH ==
            np.arange(NODES_PER_GRAPH)[:, None]).astype(np.float32)    # [16,128]
    put(R_LSEL, lsel)
    psel = (grp[None, :] == np.arange(GRAPHS_PER_BLOCK)[:, None]).astype(np.float32)
    psel /= float(NODES_PER_GRAPH)                                     # [8,128] mean pool
    put(R_PSEL, psel)
    return jnp.asarray(buf)


# ---------------------------------------------------------------------------
# Pure-JAX reference (faithful per-head GATConv math, exact division).
# ---------------------------------------------------------------------------
def _gat_layer_ref(x, adj, w, a_src, a_dst, bias, heads, d_out):
    h = x @ w
    neg_inf = jnp.float32(-1e9)
    outs = []
    for hd in range(heads):
        hc = h[:, hd * d_out:(hd + 1) * d_out]
        alpha_src = jnp.sum(hc * a_src[hd:hd + 1, :], axis=1, keepdims=True)
        alpha_dst = jnp.sum(hc * a_dst[hd:hd + 1, :], axis=1, keepdims=True)
        e = _leaky_relu(alpha_dst + alpha_src.T)
        e = jnp.where(adj > 0, e, neg_inf)
        e = e - jnp.max(e, axis=1, keepdims=True)
        pr = jnp.where(adj > 0, jnp.exp(e), 0.0)
        outs.append((pr / jnp.sum(pr, axis=1, keepdims=True)) @ hc)
    return jnp.concatenate(outs, axis=1) + bias


def reference(x, adj, pool, p):
    h1 = _elu(_gat_layer_ref(x, adj, p["w1"], p["asrc1"], p["adst1"], p["b1"],
                             HEADS, HIDDEN))
    h2 = _elu(_gat_layer_ref(h1, adj, p["w2"], p["asrc2"], p["adst2"], p["b2"],
                             1, HIDDEN))
    pooled = pool @ h2
    f1 = jnp.maximum(pooled @ p["fc1w"] + p["fc1b"], 0.0)
    return f1 @ p["fc2w"] + p["fc2b"]


if __name__ == "__main__":
    key = jax.random.PRNGKey(0)
    ks = jax.random.split(key, 12)

    # TODO(synk): gen_2nd_half_model (GraphGenerativeModel) and
    # data_preperation.join_graphs_data are external, undefined modules; the
    # "joined" graph is modeled here as the input graph itself.
    x = jax.random.normal(ks[0], (N, IN_CHANNELS), jnp.float32)

    # Dense edge structure for the reference: each game graph fully connected
    # within itself (block-diagonal), self-loops included (add_self_loops=True).
    gid = jnp.arange(N) // NODES_PER_GRAPH
    adj = (gid[:, None] == gid[None, :]).astype(jnp.float32)              # [N, N]
    pool = (jnp.arange(NUM_GRAPHS)[:, None] == gid[None, :]).astype(jnp.float32)
    pool = pool / jnp.sum(pool, axis=1, keepdims=True)                    # [B, N]

    s = 0.1  # deterministic synthetic parameter init
    params = dict(
        w1=s * jax.random.normal(ks[1], (IN_CHANNELS, HEADS * HIDDEN), jnp.float32),
        asrc1=s * jax.random.normal(ks[2], (HEADS, HIDDEN), jnp.float32),
        adst1=s * jax.random.normal(ks[3], (HEADS, HIDDEN), jnp.float32),
        b1=s * jax.random.normal(ks[4], (1, HEADS * HIDDEN), jnp.float32),
        w2=s * jax.random.normal(ks[5], (HEADS * HIDDEN, HIDDEN), jnp.float32),
        asrc2=s * jax.random.normal(ks[6], (1, HIDDEN), jnp.float32),
        adst2=s * jax.random.normal(ks[7], (1, HIDDEN), jnp.float32),
        b2=s * jax.random.normal(ks[8], (1, HIDDEN), jnp.float32),
        fc1w=s * jax.random.normal(ks[9], (HIDDEN, HIDDEN), jnp.float32),
        fc1b=jnp.zeros((1, HIDDEN), jnp.float32),
        fc2w=s * jax.random.normal(ks[10], (HIDDEN, NUM_CLASSES), jnp.float32),
        fc2b=jnp.zeros((1, NUM_CLASSES), jnp.float32),
    )

    packed = pack_params(params)
    out = jax.block_until_ready(game_outcome_predictor_v2(x, packed))
    assert out.shape == (NUM_GRAPHS, NUM_CLASSES)

    ref = reference(x, adj, pool, params)
    # tolerance covers the approx EUP reciprocal in the in-kernel softmax
    # normalization and the removed (mathematically neutral) max-subtraction.
    np.testing.assert_allclose(np.asarray(out), np.asarray(ref), rtol=2e-3, atol=1e-3)

    print("KERNEL_OK")
</pallas_src>

<mosaic_0001>
module attributes {stable_mosaic.version = 11 : i64} {
  func.func @outcome_kernel(%arg0: i32, %arg1: memref<128x16xf32, #tpu.memory_space<vmem>>, %arg2: memref<848x128xf32, #tpu.memory_space<vmem>>, %arg3: memref<8x128xf32, #tpu.memory_space<vmem>>) attributes {dimension_semantics = [#tpu.dimension_semantics<parallel>], iteration_bounds = array<i64: 8>, scalar_prefetch = 0 : i64, scratch_operands = 0 : i64, tpu.core_type = #tpu.core_type<tc>, window_params = [{transform_indices = @transform_0, window_bounds = array<i64: 128, 16>}, {pipeline_mode = #tpu.pipeline_mode<synchronous>, transform_indices = @transform_1, window_bounds = array<i64: 848, 128>}, {transform_indices = @transform_2, window_bounds = array<i64: 8, 128>}]} {
    %c0 = arith.constant 0 : index
    %c0_0 = arith.constant 0 : index
    %0 = vector.load %arg1[%c0, %c0_0] : memref<128x16xf32, #tpu.memory_space<vmem>>, vector<128x16xf32>
    %c696 = arith.constant 696 : index
    %c0_1 = arith.constant 0 : index
    %1 = vector.load %arg2[%c696, %c0_1] : memref<848x128xf32, #tpu.memory_space<vmem>>, vector<128x128xf32>
    %c824 = arith.constant 824 : index
    %c0_2 = arith.constant 0 : index
    %2 = vector.load %arg2[%c824, %c0_2] : memref<848x128xf32, #tpu.memory_space<vmem>>, vector<16x128xf32>
    %c688 = arith.constant 688 : index
    %c0_3 = arith.constant 0 : index
    %3 = vector.load %arg2[%c688, %c0_3] : memref<848x128xf32, #tpu.memory_space<vmem>>, vector<8x128xf32>
    %c0_4 = arith.constant 0 : index
    %c0_5 = arith.constant 0 : index
    %4 = vector.load %arg2[%c0_4, %c0_5] : memref<848x128xf32, #tpu.memory_space<vmem>>, vector<16x128xf32>
    %cst = arith.constant dense<0.000000e+00> : vector<128x128xf32>
    %5 = tpu.matmul %0, %4, %cst {dimension_numbers = #tpu.dot_dimension_numbers<[1], [0], [0], [1], [0, 0, 1, 1], [], []>} : vector<128x16xf32>, vector<16x128xf32>, vector<128x128xf32> -> vector<128x128xf32>
    %c24 = arith.constant 24 : index
    %c0_6 = arith.constant 0 : index
    %6 = vector.load %arg2[%c24, %c0_6] : memref<848x128xf32, #tpu.memory_space<vmem>>, vector<128x128xf32>
    %cst_7 = arith.constant dense<0.000000e+00> : vector<128x128xf32>
    %7 = tpu.matmul %5, %6, %cst_7 {dimension_numbers = #tpu.dot_dimension_numbers<[1], [0], [0], [1], [0, 0, 1, 1], [], []>} : vector<128x128xf32>, vector<128x128xf32>, vector<128x128xf32> -> vector<128x128xf32>
    %8 = vector.extract_strided_slice %7 {offsets = [0, 0], sizes = [128, 8], strides = [1, 1]} : vector<128x128xf32> to vector<128x8xf32>
    %9 = tpu.transpose %8, [1, 0] : vector<128x8xf32> -> vector<8x128xf32>
    %10 = vector.extract_strided_slice %9 {offsets = [0, 0], sizes = [1, 128], strides = [1, 1]} : vector<8x128xf32> to vector<1x128xf32>
    %11 = vector.extract_strided_slice %9 {offsets = [4, 0], sizes = [1, 128], strides = [1, 1]} : vector<8x128xf32> to vector<1x128xf32>
    %12 = vector.broadcast %11 : vector<1x128xf32> to vector<16x128xf32>
    %13 = arith.mulf %12, %2 : vector<16x128xf32>
    %cst_8 = arith.constant dense<0.000000e+00> : vector<16x128xf32>
    %14 = tpu.matmul %13, %1, %cst_8 {dimension_numbers = #tpu.dot_dimension_numbers<[1], [0], [0], [1], [0, 0, 1, 1], [], []>} : vector<16x128xf32>, vector<128x128xf32>, vector<16x128xf32> -> vector<16x128xf32>
    %15 = vector.broadcast %10 : vector<1x128xf32> to vector<16x128xf32>
    %16 = arith.addf %14, %15 : vector<16x128xf32>
    %cst_9 = arith.constant 2.000000e-01 : f32
    %17 = vector.broadcast %cst_9 : f32 to vector<16x128xf32>
    %18 = arith.mulf %17, %16 : vector<16x128xf32>
    %19 = arith.maximumf %16, %18 : vector<16x128xf32>
    %cst_10 = arith.constant 3.000000e+01 : f32
    %20 = vector.broadcast %cst_10 : f32 to vector<16x128xf32>
    %21 = arith.minimumf %19, %20 : vector<16x128xf32>
    %22 = math.exp %21 : vector<16x128xf32>
    %cst_11 = arith.constant dense<0.000000e+00> : vector<16x128xf32>
    %23 = tpu.matmul %22, %1, %cst_11 {dimension_numbers = #tpu.dot_dimension_numbers<[1], [0], [0], [1], [0, 0, 1, 1], [], []>} : vector<16x128xf32>, vector<128x128xf32>, vector<16x128xf32> -> vector<16x128xf32>
    %24 = tpu.reciprocal %23 {approx = true} : vector<16x128xf32> -> vector<16x128xf32>
    %25 = arith.mulf %22, %24 : vector<16x128xf32>
    %26 = tpu.concatenate %25, %25, %25, %25, %25, %25, %25, %25 in 0 : vector<16x128xf32>, vector<16x128xf32>, vector<16x128xf32>, vector<16x128xf32>, vector<16x128xf32>, vector<16x128xf32>, vector<16x128xf32>, vector<16x128xf32> -> vector<128x128xf32>
    %27 = arith.mulf %26, %1 : vector<128x128xf32>
    %28 = vector.extract_strided_slice %3 {offsets = [0, 0], sizes = [1, 128], strides = [1, 1]} : vector<8x128xf32> to vector<1x128xf32>
    %29 = vector.broadcast %28 : vector<1x128xf32> to vector<128x128xf32>
    %30 = arith.mulf %5, %29 : vector<128x128xf32>
    %cst_12 = arith.constant dense<0.000000e+00> : vector<128x128xf32>
    %31 = tpu.matmul %27, %30, %cst_12 {dimension_numbers = #tpu.dot_dimension_numbers<[1], [0], [0], [1], [0, 0, 1, 1], [], []>} : vector<128x128xf32>, vector<128x128xf32>, vector<128x128xf32> -> vector<128x128xf32>
    %32 = vector.extract_strided_slice %9 {offsets = [1, 0], sizes = [1, 128], strides = [1, 1]} : vector<8x128xf32> to vector<1x128xf32>
    %33 = vector.extract_strided_slice %9 {offsets = [5, 0], sizes = [1, 128], strides = [1, 1]} : vector<8x128xf32> to vector<1x128xf32>
    %34 = vector.broadcast %33 : vector<1x128xf32> to vector<16x128xf32>
    %35 = arith.mulf %34, %2 : vector<16x128xf32>
    %cst_13 = arith.constant dense<0.000000e+00> : vector<16x128xf32>
    %36 = tpu.matmul %35, %1, %cst_13 {dimension_numbers = #tpu.dot_dimension_numbers<[1], [0], [0], [1], [0, 0, 1, 1], [], []>} : vector<16x128xf32>, vector<128x128xf32>, vector<16x128xf32> -> vector<16x128xf32>
    %37 = vector.broadcast %32 : vector<1x128xf32> to vector<16x128xf32>
    %38 = arith.addf %36, %37 : vector<16x128xf32>
    %cst_14 = arith.constant 2.000000e-01 : f32
    %39 = vector.broadcast %cst_14 : f32 to vector<16x128xf32>
    %40 = arith.mulf %39, %38 : vector<16x128xf32>
    %41 = arith.maximumf %38, %40 : vector<16x128xf32>
    %cst_15 = arith.constant 3.000000e+01 : f32
    %42 = vector.broadcast %cst_15 : f32 to vector<16x128xf32>
    %43 = arith.minimumf %41, %42 : vector<16x128xf32>
    %44 = math.exp %43 : vector<16x128xf32>
    %cst_16 = arith.constant dense<0.000000e+00> : vector<16x128xf32>
    %45 = tpu.matmul %44, %1, %cst_16 {dimension_numbers = #tpu.dot_dimension_numbers<[1], [0], [0], [1], [0, 0, 1, 1], [], []>} : vector<16x128xf32>, vector<128x128xf32>, vector<16x128xf32> -> vector<16x128xf32>
    %46 = tpu.reciprocal %45 {approx = true} : vector<16x128xf32> -> vector<16x128xf32>
    %47 = arith.mulf %44, %46 : vector<16x128xf32>
    %48 = tpu.concatenate %47, %47, %47, %47, %47, %47, %47, %47 in 0 : vector<16x128xf32>, vector<16x128xf32>, vector<16x128xf32>, vector<16x128xf32>, vector<16x128xf32>, vector<16x128xf32>, vector<16x128xf32>, vector<16x128xf32> -> vector<128x128xf32>
    %49 = arith.mulf %48, %1 : vector<128x128xf32>
    %50 = vector.extract_strided_slice %3 {offsets = [1, 0], sizes = [1, 128], strides = [1, 1]} : vector<8x128xf32> to vector<1x128xf32>
    %51 = vector.broadcast %50 : vector<1x128xf32> to vector<128x128xf32>
    %52 = arith.mulf %5, %51 : vector<128x128xf32>
    %cst_17 = arith.constant dense<0.000000e+00> : vector<128x128xf32>
    %53 = tpu.matmul %49, %52, %cst_17 {dimension_numbers = #tpu.dot_dimension_numbers<[1], [0], [0], [1], [0, 0, 1, 1], [], []>} : vector<128x128xf32>, vector<128x128xf32>, vector<128x128xf32> -> vector<128x128xf32>
    %54 = arith.addf %31, %53 : vector<128x128xf32>
    %55 = vector.extract_strided_slice %9 {offsets = [2, 0], sizes = [1, 128], strides = [1, 1]} : vector<8x128xf32> to vector<1x128xf32>
    %56 = vector.extract_strided_slice %9 {offsets = [6, 0], sizes = [1, 128], strides = [1, 1]} : vector<8x128xf32> to vector<1x128xf32>
    %57 = vector.broadcast %56 : vector<1x128xf32> to vector<16x128xf32>
    %58 = arith.mulf %57, %2 : vector<16x128xf32>
    %cst_18 = arith.constant dense<0.000000e+00> : vector<16x128xf32>
    %59 = tpu.matmul %58, %1, %cst_18 {dimension_numbers = #tpu.dot_dimension_numbers<[1], [0], [0], [1], [0, 0, 1, 1], [], []>} : vector<16x128xf32>, vector<128x128xf32>, vector<16x128xf32> -> vector<16x128xf32>
    %60 = vector.broadcast %55 : vector<1x128xf32> to vector<16x128xf32>
    %61 = arith.addf %59, %60 : vector<16x128xf32>
    %cst_19 = arith.constant 2.000000e-01 : f32
    %62 = vector.broadcast %cst_19 : f32 to vector<16x128xf32>
    %63 = arith.mulf %62, %61 : vector<16x128xf32>
    %64 = arith.maximumf %61, %63 : vector<16x128xf32>
    %cst_20 = arith.constant 3.000000e+01 : f32
    %65 = vector.broadcast %cst_20 : f32 to vector<16x128xf32>
    %66 = arith.minimumf %64, %65 : vector<16x128xf32>
    %67 = math.exp %66 : vector<16x128xf32>
    %cst_21 = arith.constant dense<0.000000e+00> : vector<16x128xf32>
    %68 = tpu.matmul %67, %1, %cst_21 {dimension_numbers = #tpu.dot_dimension_numbers<[1], [0], [0], [1], [0, 0, 1, 1], [], []>} : vector<16x128xf32>, vector<128x128xf32>, vector<16x128xf32> -> vector<16x128xf32>
    %69 = tpu.reciprocal %68 {approx = true} : vector<16x128xf32> -> vector<16x128xf32>
    %70 = arith.mulf %67, %69 : vector<16x128xf32>
    %71 = tpu.concatenate %70, %70, %70, %70, %70, %70, %70, %70 in 0 : vector<16x128xf32>, vector<16x128xf32>, vector<16x128xf32>, vector<16x128xf32>, vector<16x128xf32>, vector<16x128xf32>, vector<16x128xf32>, vector<16x128xf32> -> vector<128x128xf32>
    %72 = arith.mulf %71, %1 : vector<128x128xf32>
    %73 = vector.extract_strided_slice %3 {offsets = [2, 0], sizes = [1, 128], strides = [1, 1]} : vector<8x128xf32> to vector<1x128xf32>
    %74 = vector.broadcast %73 : vector<1x128xf32> to vector<128x128xf32>
    %75 = arith.mulf %5, %74 : vector<128x128xf32>
    %cst_22 = arith.constant dense<0.000000e+00> : vector<128x128xf32>
    %76 = tpu.matmul %72, %75, %cst_22 {dimension_numbers = #tpu.dot_dimension_numbers<[1], [0], [0], [1], [0, 0, 1, 1], [], []>} : vector<128x128xf32>, vector<128x128xf32>, vector<128x128xf32> -> vector<128x128xf32>
    %77 = arith.addf %54, %76 : vector<128x128xf32>
    %78 = vector.extract_strided_slice %9 {offsets = [3, 0], sizes = [1, 128], strides = [1, 1]} : vector<8x128xf32> to vector<1x128xf32>
    %79 = vector.extract_strided_slice %9 {offsets = [7, 0], sizes = [1, 128], strides = [1, 1]} : vector<8x128xf32> to vector<1x128xf32>
    %80 = vector.broadcast %79 : vector<1x128xf32> to vector<16x128xf32>
    %81 = arith.mulf %80, %2 : vector<16x128xf32>
    %cst_23 = arith.constant dense<0.000000e+00> : vector<16x128xf32>
    %82 = tpu.matmul %81, %1, %cst_23 {dimension_numbers = #tpu.dot_dimension_numbers<[1], [0], [0], [1], [0, 0, 1, 1], [], []>} : vector<16x128xf32>, vector<128x128xf32>, vector<16x128xf32> -> vector<16x128xf32>
    %83 = vector.broadcast %78 : vector<1x128xf32> to vector<16x128xf32>
    %84 = arith.addf %82, %83 : vector<16x128xf32>
    %cst_24 = arith.constant 2.000000e-01 : f32
    %85 = vector.broadcast %cst_24 : f32 to vector<16x128xf32>
    %86 = arith.mulf %85, %84 : vector<16x128xf32>
    %87 = arith.maximumf %84, %86 : vector<16x128xf32>
    %cst_25 = arith.constant 3.000000e+01 : f32
    %88 = vector.broadcast %cst_25 : f32 to vector<16x128xf32>
    %89 = arith.minimumf %87, %88 : vector<16x128xf32>
    %90 = math.exp %89 : vector<16x128xf32>
    %cst_26 = arith.constant dense<0.000000e+00> : vector<16x128xf32>
    %91 = tpu.matmul %90, %1, %cst_26 {dimension_numbers = #tpu.dot_dimension_numbers<[1], [0], [0], [1], [0, 0, 1, 1], [], []>} : vector<16x128xf32>, vector<128x128xf32>, vector<16x128xf32> -> vector<16x128xf32>
    %92 = tpu.reciprocal %91 {approx = true} : vector<16x128xf32> -> vector<16x128xf32>
    %93 = arith.mulf %90, %92 : vector<16x128xf32>
    %94 = tpu.concatenate %93, %93, %93, %93, %93, %93, %93, %93 in 0 : vector<16x128xf32>, vector<16x128xf32>, vector<16x128xf32>, vector<16x128xf32>, vector<16x128xf32>, vector<16x128xf32>, vector<16x128xf32>, vector<16x128xf32> -> vector<128x128xf32>
    %95 = arith.mulf %94, %1 : vector<128x128xf32>
    %96 = vector.extract_strided_slice %3 {offsets = [3, 0], sizes = [1, 128], strides = [1, 1]} : vector<8x128xf32> to vector<1x128xf32>
    %97 = vector.broadcast %96 : vector<1x128xf32> to vector<128x128xf32>
    %98 = arith.mulf %5, %97 : vector<128x128xf32>
    %cst_27 = arith.constant dense<0.000000e+00> : vector<128x128xf32>
    %99 = tpu.matmul %95, %98, %cst_27 {dimension_numbers = #tpu.dot_dimension_numbers<[1], [0], [0], [1], [0, 0, 1, 1], [], []>} : vector<128x128xf32>, vector<128x128xf32>, vector<128x128xf32> -> vector<128x128xf32>
    %100 = arith.addf %77, %99 : vector<128x128xf32>
    %c16 = arith.constant 16 : index
    %c0_28 = arith.constant 0 : index
    %101 = vector.load %arg2[%c16, %c0_28] : memref<848x128xf32, #tpu.memory_space<vmem>>, vector<1x128xf32>
    %102 = vector.broadcast %101 : vector<1x128xf32> to vector<128x128xf32>
    %103 = arith.addf %100, %102 : vector<128x128xf32>
    %cst_29 = arith.constant 0.000000e+00 : f32
    %104 = vector.broadcast %cst_29 : f32 to vector<128x128xf32>
    %105 = arith.cmpf ogt, %103, %104 : vector<128x128xf32>
    %cst_30 = arith.constant 0.000000e+00 : f32
    %106 = vector.broadcast %cst_30 : f32 to vector<128x128xf32>
    %107 = arith.minimumf %103, %106 : vector<128x128xf32>
    %108 = math.exp %107 : vector<128x128xf32>
    %cst_31 = arith.constant 1.000000e+00 : f32
    %109 = vector.broadcast %cst_31 : f32 to vector<128x128xf32>
    %110 = arith.subf %108, %109 : vector<128x128xf32>
    %111 = arith.select %105, %103, %110 : vector<128x128xi1>, vector<128x128xf32>
    %c152 = arith.constant 152 : index
    %c0_32 = arith.constant 0 : index
    %112 = vector.load %arg2[%c152, %c0_32] : memref<848x128xf32, #tpu.memory_space<vmem>>, vector<128x128xf32>
    %cst_33 = arith.constant dense<0.000000e+00> : vector<128x128xf32>
    %113 = tpu.matmul %111, %112, %cst_33 {dimension_numbers = #tpu.dot_dimension_numbers<[1], [0], [0], [1], [0, 0, 1, 1], [], []>} : vector<128x128xf32>, vector<128x128xf32>, vector<128x128xf32> -> vector<128x128xf32>
    %c288 = arith.constant 288 : index
    %c0_34 = arith.constant 0 : index
    %114 = vector.load %arg2[%c288, %c0_34] : memref<848x128xf32, #tpu.memory_space<vmem>>, vector<128x128xf32>
    %cst_35 = arith.constant dense<0.000000e+00> : vector<128x128xf32>
    %115 = tpu.matmul %113, %114, %cst_35 {dimension_numbers = #tpu.dot_dimension_numbers<[1], [0], [0], [1], [0, 0, 1, 1], [], []>} : vector<128x128xf32>, vector<128x128xf32>, vector<128x128xf32> -> vector<128x128xf32>
    %116 = vector.extract_strided_slice %115 {offsets = [0, 0], sizes = [128, 2], strides = [1, 1]} : vector<128x128xf32> to vector<128x2xf32>
    %117 = tpu.transpose %116, [1, 0] : vector<128x2xf32> -> vector<2x128xf32>
    %118 = vector.extract_strided_slice %117 {offsets = [0, 0], sizes = [1, 128], strides = [1, 1]} : vector<2x128xf32> to vector<1x128xf32>
    %119 = vector.extract_strided_slice %117 {offsets = [1, 0], sizes = [1, 128], strides = [1, 1]} : vector<2x128xf32> to vector<1x128xf32>
    %120 = vector.broadcast %119 : vector<1x128xf32> to vector<16x128xf32>
    %121 = arith.mulf %120, %2 : vector<16x128xf32>
    %cst_36 = arith.constant dense<0.000000e+00> : vector<16x128xf32>
    %122 = tpu.matmul %121, %1, %cst_36 {dimension_numbers = #tpu.dot_dimension_numbers<[1], [0], [0], [1], [0, 0, 1, 1], [], []>} : vector<16x128xf32>, vector<128x128xf32>, vector<16x128xf32> -> vector<16x128xf32>
    %123 = vector.broadcast %118 : vector<1x128xf32> to vector<16x128xf32>
    %124 = arith.addf %122, %123 : vector<16x128xf32>
    %cst_37 = arith.constant 2.000000e-01 : f32
    %125 = vector.broadcast %cst_37 : f32 to vector<16x128xf32>
    %126 = arith.mulf %125, %124 : vector<16x128xf32>
    %127 = arith.maximumf %124, %126 : vector<16x128xf32>
    %cst_38 = arith.constant 3.000000e+01 : f32
    %128 = vector.broadcast %cst_38 : f32 to vector<16x128xf32>
    %129 = arith.minimumf %127, %128 : vector<16x128xf32>
    %130 = math.exp %129 : vector<16x128xf32>
    %cst_39 = arith.constant dense<0.000000e+00> : vector<16x128xf32>
    %131 = tpu.matmul %130, %1, %cst_39 {dimension_numbers = #tpu.dot_dimension_numbers<[1], [0], [0], [1], [0, 0, 1, 1], [], []>} : vector<16x128xf32>, vector<128x128xf32>, vector<16x128xf32> -> vector<16x128xf32>
    %132 = tpu.reciprocal %131 {approx = true} : vector<16x128xf32> -> vector<16x128xf32>
    %133 = arith.mulf %130, %132 : vector<16x128xf32>
    %134 = tpu.concatenate %133, %133, %133, %133, %133, %133, %133, %133 in 0 : vector<16x128xf32>, vector<16x128xf32>, vector<16x128xf32>, vector<16x128xf32>, vector<16x128xf32>, vector<16x128xf32>, vector<16x128xf32>, vector<16x128xf32> -> vector<128x128xf32>
    %135 = arith.mulf %134, %1 : vector<128x128xf32>
    %c280 = arith.constant 280 : index
    %c0_40 = arith.constant 0 : index
    %136 = vector.load %arg2[%c280, %c0_40] : memref<848x128xf32, #tpu.memory_space<vmem>>, vector<1x128xf32>
    %cst_41 = arith.constant dense<0.000000e+00> : vector<128x128xf32>
    %137 = tpu.matmul %135, %113, %cst_41 {dimension_numbers = #tpu.dot_dimension_numbers<[1], [0], [0], [1], [0, 0, 1, 1], [], []>} : vector<128x128xf32>, vector<128x128xf32>, vector<128x128xf32> -> vector<128x128xf32>
    %138 = vector.broadcast %136 : vector<1x128xf32> to vector<128x128xf32>
    %139 = arith.addf %137, %138 : vector<128x128xf32>
    %cst_42 = arith.constant 0.000000e+00 : f32
    %140 = vector.broadcast %cst_42 : f32 to vector<128x128xf32>
    %141 = arith.cmpf ogt, %139, %140 : vector<128x128xf32>
    %cst_43 = arith.constant 0.000000e+00 : f32
    %142 = vector.broadcast %cst_43 : f32 to vector<128x128xf32>
    %143 = arith.minimumf %139, %142 : vector<128x128xf32>
    %144 = math.exp %143 : vector<128x128xf32>
    %cst_44 = arith.constant 1.000000e+00 : f32
    %145 = vector.broadcast %cst_44 : f32 to vector<128x128xf32>
    %146 = arith.subf %144, %145 : vector<128x128xf32>
    %147 = arith.select %141, %139, %146 : vector<128x128xi1>, vector<128x128xf32>
    %c840 = arith.constant 840 : index
    %c0_45 = arith.constant 0 : index
    %148 = vector.load %arg2[%c840, %c0_45] : memref<848x128xf32, #tpu.memory_space<vmem>>, vector<8x128xf32>
    %cst_46 = arith.constant dense<0.000000e+00> : vector<8x128xf32>
    %149 = tpu.matmul %148, %147, %cst_46 {dimension_numbers = #tpu.dot_dimension_numbers<[1], [0], [0], [1], [0, 0, 1, 1], [], []>} : vector<8x128xf32>, vector<128x128xf32>, vector<8x128xf32> -> vector<8x128xf32>
    %c416 = arith.constant 416 : index
    %c0_47 = arith.constant 0 : index
    %150 = vector.load %arg2[%c416, %c0_47] : memref<848x128xf32, #tpu.memory_space<vmem>>, vector<128x128xf32>
    %c544 = arith.constant 544 : index
    %c0_48 = arith.constant 0 : index
    %151 = vector.load %arg2[%c544, %c0_48] : memref<848x128xf32, #tpu.memory_space<vmem>>, vector<1x128xf32>
    %cst_49 = arith.constant dense<0.000000e+00> : vector<8x128xf32>
    %152 = tpu.matmul %149, %150, %cst_49 {dimension_numbers = #tpu.dot_dimension_numbers<[1], [0], [0], [1], [0, 0, 1, 1], [], []>} : vector<8x128xf32>, vector<128x128xf32>, vector<8x128xf32> -> vector<8x128xf32>
    %153 = vector.broadcast %151 : vector<1x128xf32> to vector<8x128xf32>
    %154 = arith.addf %152, %153 : vector<8x128xf32>
    %cst_50 = arith.constant 0.000000e+00 : f32
    %155 = vector.broadcast %cst_50 : f32 to vector<8x128xf32>
    %156 = arith.maximumf %154, %155 : vector<8x128xf32>
    %c552 = arith.constant 552 : index
    %c0_51 = arith.constant 0 : index
    %157 = vector.load %arg2[%c552, %c0_51] : memref<848x128xf32, #tpu.memory_space<vmem>>, vector<128x128xf32>
    %c680 = arith.constant 680 : index
    %c0_52 = arith.constant 0 : index
    %158 = vector.load %arg2[%c680, %c0_52] : memref<848x128xf32, #tpu.memory_space<vmem>>, vector<1x128xf32>
    %cst_53 = arith.constant dense<0.000000e+00> : vector<8x128xf32>
    %159 = tpu.matmul %156, %157, %cst_53 {dimension_numbers = #tpu.dot_dimension_numbers<[1], [0], [0], [1], [0, 0, 1, 1], [], []>} : vector<8x128xf32>, vector<128x128xf32>, vector<8x128xf32> -> vector<8x128xf32>
    %160 = vector.broadcast %158 : vector<1x128xf32> to vector<8x128xf32>
    %161 = arith.addf %159, %160 : vector<8x128xf32>
    %c0_54 = arith.constant 0 : index
    %c0_55 = arith.constant 0 : index
    %162 = vector.load %arg3[%c0_54, %c0_55] : memref<8x128xf32, #tpu.memory_space<vmem>>, vector<8x128xf32>
    tpu.vector_store %arg3[%c0_54, %c0_55], %161 {strides = array<i32>} : memref<8x128xf32, #tpu.memory_space<vmem>>, vector<8x128xf32>,
    return
  }
  func.func @transform_0(%arg0: i32) -> (i32, i32) {
    %c0_i32 = arith.constant 0 : i32
    %c0_i32_0 = arith.constant 0 : i32
    return %arg0, %c0_i32 : i32, i32
  }
  func.func @transform_1(%arg0: i32) -> (i32, i32) {
    %c0_i32 = arith.constant 0 : i32
    %c0_i32_0 = arith.constant 0 : i32
    %c0_i32_1 = arith.constant 0 : i32
    return %c0_i32, %c0_i32_0 : i32, i32
  }
  func.func @transform_2(%arg0: i32) -> (i32, i32) {
    %c0_i32 = arith.constant 0 : i32
    %c0_i32_0 = arith.constant 0 : i32
    return %arg0, %c0_i32 : i32, i32
  }
}

</mosaic_0001>

<bundles_post_ra>
// kernel: tpu_custom_call.1
= control target key start
LH: loop header
LB: loop body
LE: loop exit
PB: predicated region body
PF: predicated region fallthrough
CT: control target
= control target key end

     0   :  { %7 = vsyncpa [#allocation3], 0  ;;  %s3371_s0 = inlined_call_operand.vmem [shape: f32[1024,16], index: 0, kind: input, shape index: {}]   ;;  %s3372_s1 = inlined_call_operand.vmem [shape: f32[848,128], index: 1, kind: input, shape index: {}]   ;;  %s3373_s2 = inlined_call_operand.hbm [shape: f32[64,128], index: 2, kind: output, shape index: {}]  }
   0x1   :  { %9 = vsyncpa [#allocation3 + $0x1], 0  ;;  %s2148_s9 = smov 0   ;;  %s2150_s10 = smov 0  }
   0x2   :  { %s2152_s11 = smov 0   ;;  %s2154_s12 = smov 0  }
   0x3 LB: > { %s2169_s13 = sadd.s32 4294967295, %s2131_s12   ;;  %s1813_s14 = sadd.s32 4294967294, %s2131_s12   ;;  %s2131_s12 = sphi %s2154_s12, %s3399_s12   ;;  %s2127_s11 = sphi %s2152_s11, %s3398_s11   ;;  %s2123_s10 = sphi %s2150_s10, %s3397_s10   ;;  %s2119_s9 = sphi %s2148_s9, %s3396_s9  }
   0x4   : > { %s2173_s15 = sadd.s32 1, %s2131_s12   ;;  %s69_s16 = sadd.s32 1, %s2127_s11 }
   0x5   : > { %s66_s17 = ssub.s32 %s2131_s12, %s2173_s15  ;;  %p79_p0 = scmp.ne.s32.totalorder %s2127_s11, %s2123_s10 }
   0x6   : > { %p67_p1 = scmp.eq.s32.totalorder %s66_s17, 0  ;;  %p80_p2 = scmp.eq.s32.totalorder %s2169_s13, 7 }
   0x7   : > { %p85_p3 = scmp.ne.s32.totalorder %s2123_s10, %s2119_s9  ;;  %p86_p4 = scmp.eq.s32.totalorder %s1813_s14, 7 }
   0x8   : > { %s2184_s18 = scalar_select %p67_p1, %s2127_s11, %s69_s16  }
   0x9   : > { %p2186_p5 = por %p80_p2, %p79_p0  ;;  %p2190_p6 = por %p86_p4, %p85_p3 }
   0xa   : > { %p1816_p7 = scmp.ge.s32.totalorder %s2131_s12, 1  ;;  %p116_p8 = scmp.lt.s32.totalorder %s2131_s12, 9 }
   0xc   : > { %p117_p9 = pnand %p1816_p7, %p116_p8 }
   0xe   : > { %120 = sbr.rel (%p117_p9) target bundleno = 2783 (0xadf), region = 28 }
  0x13   : > { %v180_v0 = vld [vmem:[%s3372_s1 + $0x8] sm:$0xff]  ;;  %v179_v1 = vld [vmem:[%s3372_s1] sm:$0xff]  ;;  %s1818_s25 = sshll.u32 %s2169_s13, 4  ;;  %vm181_vm0 = vcmask 130048   ;;  %v310_v10 = vld [vmem:[%s3372_s1 + $0x90] sm:$0xff]  ;;  %s1869_s27 = sshll.u32 %s2169_s13, 3 }
  0x14   : > { %244 = vmatpush.msra.mxu0 %v180_v0  ;;  %p139_p10 = scmp.lt.s32.totalorder %s1818_s25, 127  ;;  %311 = vmatpush.msra.mxu1 %v310_v10  ;;  %v309_v12 = vld [vmem:[%s3372_s1 + $0x88] sm:$0xff]  ;;  %v308_v13 = vld [vmem:[%s3372_s1 + $0x80] sm:$0xff]  ;;  %v307_v14 = vld [vmem:[%s3372_s1 + $0x78] sm:$0xff]  ;;  %s1749_s3 = scalar_lea.hbm %s3373_s2, %s1869_s27 }
  0x15   : > { %v306_v15 = vld [vmem:[%s3372_s1 + $0x70] sm:$0xff]  ;;  %v305_v17 = vld [vmem:[%s3372_s1 + $0x68] sm:$0xff]  ;;  %v304_v18 = vld [vmem:[%s3372_s1 + $0x60] sm:$0xff]  ;;  %s1753_s8 = sshll.u32 %s1749_s3, 4  ;;  %s2089_s22 = scalar_lea.hbm %s3373_s2, 64  ;;  %s1754_s8 = int_to_ptr.hbm [resolvable:$true] %s1753_s8 }
  0x16   : > { %245 = vmatpush.msra.mxu0 %v179_v1  ;;  %s3401_s25 = smov (!%p139_p10, %s1818_s25), 127  ;;  %312 = vmatpush.msra.mxu1 %v309_v12  ;;  %v303_v19 = vld [vmem:[%s3372_s1 + $0x58] sm:$0xff]  ;;  %v302_v20 = vld [vmem:[%s3372_s1 + $0x50] sm:$0xff]  ;;  %v301_v22 = vld [vmem:[%s3372_s1 + $0x48] sm:$0xff]  ;;  %s2083_s16 = sshra.s32 %s1754_s8, 4  ;;  %s2084_s16 = int_to_ptr.hbm [resolvable:$true] %s2083_s16 }
  0x17   : > { %s1819_s26 = sshll.u32 %s3401_s25, 3  ;;  %v300_v23 = vld [vmem:[%s3372_s1 + $0x40] sm:$0xff]  ;;  %v299_v24 = vld [vmem:[%s3372_s1 + $0x38] sm:$0xff]  ;;  %v298_v25 = vld [vmem:[%s3372_s1 + $0x30] sm:$0xff]  ;;  %s135_s25 = sand.u32 1, %s2123_s10  }
  0x18   : > { %s2206_s29 = scalar_lea.vmem %s3371_s0, %s1819_s26  ;;  %313 = vmatpush.msra.mxu1 %v308_v13  ;;  %v297_v27 = vld [vmem:[%s3372_s1 + $0x28] sm:$0xff]  ;;  %v296_v28 = vld [vmem:[%s3372_s1 + $0x20] sm:$0xff]  ;;  %v295_v29 = vld [vmem:[%s3372_s1 + $0x18] sm:$0xff]  ;;  %s1817_s26 = sshll.u32 %s135_s25, 3 }
  0x19   : > { %v144_v2 = vld [vmem:[%s2206_s29] sm:$0xff]  ;;  %v145_v3 = vld [vmem:[%s2206_s29 + $0x8] sm:$0xff]  ;;  %v146_v4 = vld [vmem:[%s2206_s29 + $0x10] sm:$0xff]  ;;  %s137_s6 = scalar_lea.vmem [#allocation2], %s1817_s26  ;;  %s1739_s14 = scalar_lea.sflag [#allocation3], %s135_s25 }
  0x1a   : > { %1820 = vmatmul.msk.f32.vlgmr.msra.gmra.mxu0 %vm181_vm0, %v144_v2  ;;  %v147_v5 = vld [vmem:[%s2206_s29 + $0x18] sm:$0xff]  ;;  %v148_v6 = vld [vmem:[%s2206_s29 + $0x20] sm:$0xff]  ;;  %v149_v7 = vld [vmem:[%s2206_s29 + $0x28] sm:$0xff]  ;;  %314 = vmatpush.msra.mxu1 %v307_v14  ;;  %s1751_s7 = sshll.u32 %s137_s6, 4  ;;  %s2085_s13 = scalar_lea.hbm %s2084_s16, 8  ;;  %s1752_s7 = int_to_ptr.vmem [resolvable:$true] %s1751_s7 }
  0x1b   : > { %v150_v8 = vld [vmem:[%s2206_s29 + $0x30] sm:$0xff]  ;;  %v151_v9 = vld [vmem:[%s2206_s29 + $0x38] sm:$0xff]  ;;  %v152_v11 = vld [vmem:[%s2206_s29 + $0x40] sm:$0xff]  ;;  %p2086_p11 = scmp.ne.s32.totalorder %s2084_s16, %s2085_s13  ;;  %p2090_p0 = scmp.lt.s32.totalorder %s2084_s16, %s3373_s2 }
  0x1c   : > { %v153_v16 = vld [vmem:[%s2206_s29 + $0x48] sm:$0xff]  ;;  %315 = vmatpush.msra.mxu1 %v306_v15  ;;  %v154_v21 = vld [vmem:[%s2206_s29 + $0x50] sm:$0xff]  ;;  %v155_v26 = vld [vmem:[%s2206_s29 + $0x58] sm:$0xff]  ;;  %p2091_p1 = scmp.lt.s32.totalorder %s2089_s22, %s2085_s13 }
  0x1d   : > { %v156_v30 = vld [vmem:[%s2206_s29 + $0x60] sm:$0xff]  ;;  %v157_v31 = vld [vmem:[%s2206_s29 + $0x68] sm:$0xff]  ;;  %v158_v32 = vld [vmem:[%s2206_s29 + $0x70] sm:$0xff]  ;;  %p2087_p12 = pnand %p2086_p11, %p2186_p5 }
  0x1e   : > { %316 = vmatpush.msra.mxu1 %v305_v17  ;;  %v159_v33 = vld [vmem:[%s2206_s29 + $0x78] sm:$0xff]  ;;  %v2336_v49 = vld [vmem:[%s3372_s1 + $0x2b0] sm:$0xff]  ;;  %v2414_v15 = vld [vmem:[%s3372_s1 + $0x328] sm:$0xff]  ;;  %p2092_p2 = por %p2091_p1, %p2090_p0 }
  0x1f   : > { %v585_v50 = vperm.slane %v2336_v49, 1  ;;  %v2409_v14 = vld [vmem:[%s3372_s1 + $0x330] sm:$0xff]  ;;  %p2088_p13 = pneg %p2087_p12 }
  0x20   : > { %317 = vmatpush.msra.mxu1 %v304_v18  ;;  %3386 = vst [vmem:[#allocation5_spill] sm:$0xff] %v2409_v14  ;;  %412 = vmatpush.msra.mxu2 %v2409_v14  ;;  %v2434_v18 = vld [vmem:[%s3372_s1 + $0x318] sm:$0xff] }
  0x21   : > { %445 = vmatpush.msra.mxu3 %v2409_v14  ;;  %p2093_p3 = pnand %p2092_p2, %p2088_p13 }
  0x22   : > { %1821 = vmatmul.msk.f32.gmra.mxu0 %vm181_vm0, %v145_v3  ;;  %318 = vmatpush.msra.mxu1 %v303_v19  ;;  %v2439_v19 = vld [vmem:[%s3372_s1 + $0x310] sm:$0xff] }
  0x23   : > { %413 = vmatpush.msra.mxu2 %v2414_v15  ;;  %446 = vmatpush.msra.mxu3 %v2414_v15 }
  0x24   : > { %319 = vmatpush.msra.mxu1 %v302_v20  ;;  %v2447_v20 = vld [vmem:[%s3372_s1 + $0x308] sm:$0xff] }
  0x25   : > { %3387 = vst [vmem:[#allocation6_spill] sm:$0xff] %v2447_v20 }
  0x26   : > { %320 = vmatpush.msra.mxu1 %v301_v22 }
  0x28   : > { %321 = vmatpush.msra.mxu1 %v300_v23  ;;  %v2469_v23 = vld [vmem:[%s3372_s1 + $0x2f8] sm:$0xff] }
  0x2a   : > { %1822 = vmatmul.msk.f32.gmra.mxu0 %vm181_vm0, %v146_v4  ;;  %322 = vmatpush.msra.mxu1 %v299_v24  ;;  %v2474_v24 = vld [vmem:[%s3372_s1 + $0x2f0] sm:$0xff] }
  0x2c   : > { %323 = vmatpush.msra.mxu1 %v298_v25  ;;  %v2482_v25 = vld [vmem:[%s3372_s1 + $0x2e8] sm:$0xff] }
  0x2e   : > { %324 = vmatpush.msra.mxu1 %v297_v27  ;;  %v2500_v27 = vld [vmem:[%s3372_s1 + $0x2d8] sm:$0xff] }
  0x30   : > { %325 = vmatpush.msra.mxu1 %v296_v28 }
  0x32   : > { %1823 = vmatmul.msk.f32.gmra.mxu0 %vm181_vm0, %v147_v5  ;;  %326 = vmatpush.msra.mxu1 %v295_v29  ;;  %v2509_v29 = vld [vmem:[%s3372_s1 + $0x2d0] sm:$0xff] }
  0x34   : > { %769 = vmatpush.msrb.mxu1 %v2409_v14 }
  0x36   : > { %770 = vmatpush.msrb.mxu1 %v2414_v15 }
  0x3a   : > { %1824 = vmatmul.msk.f32.gmra.mxu0 %vm181_vm0, %v148_v6 }
  0x42   : > { %1825 = vmatmul.msk.f32.gmra.mxu0 %vm181_vm0, %v149_v7 }
  0x4a   : > { %1826 = vmatmul.msk.f32.gmra.mxu0 %vm181_vm0, %v150_v8 }
  0x52   : > { %1827 = vmatmul.msk.f32.gmra.mxu0 %vm181_vm0, %v151_v9 }
  0x5a   : > { %1828 = vmatmul.msk.f32.gmra.mxu0 %vm181_vm0, %v152_v11 }
  0x62   : > { %1829 = vmatmul.msk.f32.gmra.mxu0 %vm181_vm0, %v153_v16  ;;  %v2427_v16 = vld [vmem:[%s3372_s1 + $0x320] sm:$0xff] }
  0x63   : > { %414 = vmatpush.msra.mxu2 %v2427_v16  ;;  %447 = vmatpush.msra.mxu3 %v2427_v16 }
  0x64   : > { %771 = vmatpush.msrb.mxu1 %v2427_v16 }
  0x65   : > { %415 = vmatpush.msra.mxu2 %v2434_v18  ;;  %448 = vmatpush.msra.mxu3 %v2434_v18 }
  0x66   : > { %772 = vmatpush.msrb.mxu1 %v2434_v18 }
  0x67   : > { %416 = vmatpush.msra.mxu2 %v2439_v19  ;;  %449 = vmatpush.msra.mxu3 %v2439_v19 }
  0x68   : > { %773 = vmatpush.msrb.mxu1 %v2439_v19 }
  0x69   : > { %417 = vmatpush.msra.mxu2 %v2447_v20  ;;  %450 = vmatpush.msra.mxu3 %v2447_v20 }
  0x6a   : > { %1830 = vmatmul.msk.f32.gmra.mxu0 %vm181_vm0, %v154_v21  ;;  %v2460_v21 = vld [vmem:[%s3372_s1 + $0x300] sm:$0xff]  ;;  %774 = vmatpush.msrb.mxu1 %v2447_v20 }
  0x6b   : > { %3388 = vst [vmem:[#allocation7_spill] sm:$0xff] %v2460_v21  ;;  %418 = vmatpush.msra.mxu2 %v2460_v21  ;;  %451 = vmatpush.msra.mxu3 %v2460_v21 }
  0x6c   : > { %775 = vmatpush.msrb.mxu1 %v2460_v21 }
  0x6d   : > { %419 = vmatpush.msra.mxu2 %v2469_v23  ;;  %452 = vmatpush.msra.mxu3 %v2469_v23 }
  0x6e   : > { %776 = vmatpush.msrb.mxu1 %v2469_v23 }
  0x6f   : > { %420 = vmatpush.msra.mxu2 %v2474_v24  ;;  %453 = vmatpush.msra.mxu3 %v2474_v24 }
  0x70   : > { %777 = vmatpush.msrb.mxu1 %v2474_v24 }
  0x71   : > { %421 = vmatpush.msra.mxu2 %v2482_v25  ;;  %454 = vmatpush.msra.mxu3 %v2482_v25 }
  0x72   : > { %1831 = vmatmul.msk.f32.gmra.mxu0 %vm181_vm0, %v155_v26  ;;  %v2491_v26 = vld [vmem:[%s3372_s1 + $0x2e0] sm:$0xff]  ;;  %778 = vmatpush.msrb.mxu1 %v2482_v25 }
  0x73   : > { %422 = vmatpush.msra.mxu2 %v2491_v26  ;;  %455 = vmatpush.msra.mxu3 %v2491_v26 }
  0x74   : > { %779 = vmatpush.msrb.mxu1 %v2491_v26 }
  0x75   : > { %423 = vmatpush.msra.mxu2 %v2500_v27  ;;  %456 = vmatpush.msra.mxu3 %v2500_v27 }
  0x76   : > { %780 = vmatpush.msrb.mxu1 %v2500_v27 }
  0x77   : > { %424 = vmatpush.msra.mxu2 %v2509_v29  ;;  %457 = vmatpush.msra.mxu3 %v2509_v29 }
  0x78   : > { %781 = vmatpush.msrb.mxu1 %v2509_v29 }
  0x7a   : > { %1832 = vmatmul.msk.f32.gmra.mxu0 %vm181_vm0, %v156_v30  ;;  %v2517_v30 = vld [vmem:[%s3372_s1 + $0x2c8] sm:$0xff] }
  0x7b   : > { %425 = vmatpush.msra.mxu2 %v2517_v30  ;;  %458 = vmatpush.msra.mxu3 %v2517_v30 }
  0x7c   : > { %782 = vmatpush.msrb.mxu1 %v2517_v30 }
  0x82   : > { %1833 = vmatmul.msk.f32.gmra.mxu0 %vm181_vm0, %v157_v31  ;;  %v2526_v31 = vld [vmem:[%s3372_s1 + $0x2c0] sm:$0xff] }
  0x83   : > { %426 = vmatpush.msra.mxu2 %v2526_v31  ;;  %459 = vmatpush.msra.mxu3 %v2526_v31 }
  0x84   : > { %783 = vmatpush.msrb.mxu1 %v2526_v31 }
  0x8a   : > { %1834 = vmatmul.msk.f32.gmra.mxu0 %vm181_vm0, %v158_v32  ;;  %v2535_v32 = vld [vmem:[%s3372_s1 + $0x2b8] sm:$0xff] }
  0x8b   : > { %427 = vmatpush.msra.mxu2 %v2535_v32  ;;  %460 = vmatpush.msra.mxu3 %v2535_v32 }
  0x8c   : > { %784 = vmatpush.msrb.mxu1 %v2535_v32 }
  0x8d   : > { %509 = vmatpush.msrb.mxu2 %v2409_v14  ;;  %542 = vmatpush.msrb.mxu3 %v2409_v14 }
  0x8f   : > { %510 = vmatpush.msrb.mxu2 %v2414_v15  ;;  %543 = vmatpush.msrb.mxu3 %v2414_v15 }
  0x91   : > { %511 = vmatpush.msrb.mxu2 %v2427_v16  ;;  %544 = vmatpush.msrb.mxu3 %v2427_v16 }
  0x92   : > { %1835 = vmatmul.msk.f32.gmra.mxu0 %vm181_vm0, %v159_v33 }
  0x93   : > { %512 = vmatpush.msrb.mxu2 %v2434_v18  ;;  %545 = vmatpush.msrb.mxu3 %v2434_v18 }
  0x95   : > { %513 = vmatpush.msrb.mxu2 %v2439_v19  ;;  %546 = vmatpush.msrb.mxu3 %v2439_v19 }
  0x97   : > { %v2288_v34 = vpop.f32.mrf.mxu0  ;;  %514 = vmatpush.msrb.mxu2 %v2447_v20  ;;  %547 = vmatpush.msrb.mxu3 %v2447_v20 }
  0x98   : > { %327 = vmatmul.f32.vlgmr.msra.gmra.mxu1 %v2288_v34  ;;  %v2403_v7 = vmul.f32 %v585_v50, %v2288_v34 }
  0x99   : > { %914 = vmatpush.msra.mxu1 %v2409_v14  ;;  %515 = vmatpush.msrb.mxu2 %v2460_v21 }
  0x9a   : > { %548 = vmatpush.msrb.mxu3 %v2460_v21 }
  0x9b   : > { %915 = vmatpush.msra.mxu1 %v2414_v15  ;;  %516 = vmatpush.msrb.mxu2 %v2469_v23 }
  0x9c   : > { %549 = vmatpush.msrb.mxu3 %v2469_v23 }
  0x9d   : > { %916 = vmatpush.msra.mxu1 %v2427_v16  ;;  %517 = vmatpush.msrb.mxu2 %v2474_v24 }
  0x9e   : > { %550 = vmatpush.msrb.mxu3 %v2474_v24 }
  0x9f   : > { %v2291_v35 = vpop.f32.mrf.mxu0  ;;  %917 = vmatpush.msra.mxu1 %v2434_v18  ;;  %518 = vmatpush.msrb.mxu2 %v2482_v25 }
  0xa0   : > { %330 = vmatmul.f32.gmra.mxu1 %v2291_v35  ;;  %v2399_v5 = vmul.f32 %v585_v50, %v2291_v35  ;;  %551 = vmatpush.msrb.mxu3 %v2482_v25 }
  0xa1   : > { %918 = vmatpush.msra.mxu1 %v2439_v19  ;;  %519 = vmatpush.msrb.mxu2 %v2491_v26 }
  0xa2   : > { %552 = vmatpush.msrb.mxu3 %v2491_v26 }
  0xa3   : > { %919 = vmatpush.msra.mxu1 %v2447_v20  ;;  %520 = vmatpush.msrb.mxu2 %v2500_v27 }
  0xa4   : > { %553 = vmatpush.msrb.mxu3 %v2500_v27 }
  0xa5   : > { %920 = vmatpush.msra.mxu1 %v2460_v21  ;;  %521 = vmatpush.msrb.mxu2 %v2509_v29 }
  0xa6   : > { %554 = vmatpush.msrb.mxu3 %v2509_v29 }
  0xa7   : > { %v2294_v36 = vpop.f32.mrf.mxu0  ;;  %921 = vmatpush.msra.mxu1 %v2469_v23  ;;  %522 = vmatpush.msrb.mxu2 %v2517_v30 }
  0xa8   : > { %333 = vmatmul.f32.gmra.mxu1 %v2294_v36  ;;  %v2395_v4 = vmul.f32 %v585_v50, %v2294_v36  ;;  %555 = vmatpush.msrb.mxu3 %v2517_v30 }
  0xa9   : > { %922 = vmatpush.msra.mxu1 %v2474_v24  ;;  %523 = vmatpush.msrb.mxu2 %v2526_v31 }
  0xaa   : > { %556 = vmatpush.msrb.mxu3 %v2526_v31 }
  0xab   : > { %923 = vmatpush.msra.mxu1 %v2482_v25  ;;  %524 = vmatpush.msrb.mxu2 %v2535_v32 }
  0xac   : > { %557 = vmatpush.msrb.mxu3 %v2535_v32 }
  0xad   : > { %924 = vmatpush.msra.mxu1 %v2491_v26 }
  0xaf   : > { %v2297_v37 = vpop.f32.mrf.mxu0  ;;  %925 = vmatpush.msra.mxu1 %v2500_v27 }
  0xb0   : > { %336 = vmatmul.f32.gmra.mxu1 %v2297_v37  ;;  %v2391_v3 = vmul.f32 %v585_v50, %v2297_v37 }
  0xb1   : > { %926 = vmatpush.msra.mxu1 %v2509_v29 }
  0xb3   : > { %927 = vmatpush.msra.mxu1 %v2517_v30 }
  0xb5   : > { %928 = vmatpush.msra.mxu1 %v2526_v31 }
  0xb7   : > { %v2300_v38 = vpop.f32.mrf.mxu0  ;;  %929 = vmatpush.msra.mxu1 %v2535_v32 }
  0xb8   : > { %339 = vmatmul.f32.gmra.mxu1 %v2300_v38  ;;  %v2387_v2 = vmul.f32 %v585_v50, %v2300_v38 }
  0xbf   : > { %v2303_v39 = vpop.f32.mrf.mxu0 }
  0xc0   : > { %342 = vmatmul.f32.gmra.mxu1 %v2303_v39  ;;  %v2383_v0 = vmul.f32 %v585_v50, %v2303_v39 }
  0xc7   : > { %v2306_v40 = vpop.f32.mrf.mxu0 }
  0xc8   : > { %345 = vmatmul.f32.gmra.mxu1 %v2306_v40  ;;  %v2379_v63 = vmul.f32 %v585_v50, %v2306_v40 }
  0xcf   : > { %v2309_v41 = vpop.f32.mrf.mxu0 }
  0xd0   : > { %348 = vmatmul.f32.gmra.mxu1 %v2309_v41  ;;  %v2375_v62 = vmul.f32 %v585_v50, %v2309_v41 }
  0xd7   : > { %v2312_v42 = vpop.f32.mrf.mxu0 }
  0xd8   : > { %351 = vmatmul.f32.gmra.mxu1 %v2312_v42  ;;  %v2371_v61 = vmul.f32 %v585_v50, %v2312_v42 }
  0xdf   : > { %v2315_v43 = vpop.f32.mrf.mxu0 }
  0xe0   : > { %354 = vmatmul.f32.gmra.mxu1 %v2315_v43  ;;  %v2367_v59 = vmul.f32 %v585_v50, %v2315_v43 }
  0xe7   : > { %v2318_v44 = vpop.f32.mrf.mxu0 }
  0xe8   : > { %357 = vmatmul.f32.gmra.mxu1 %v2318_v44  ;;  %v2363_v58 = vmul.f32 %v585_v50, %v2318_v44 }
  0xef   : > { %v2321_v45 = vpop.f32.mrf.mxu0 }
  0xf0   : > { %360 = vmatmul.f32.gmra.mxu1 %v2321_v45  ;;  %v2359_v57 = vmul.f32 %v585_v50, %v2321_v45 }
  0xf7   : > { %v2324_v46 = vpop.f32.mrf.mxu0 }
  0xf8   : > { %363 = vmatmul.f32.gmra.mxu1 %v2324_v46  ;;  %v2355_v56 = vmul.f32 %v585_v50, %v2324_v46 }
  0xff   : > { %v2327_v47 = vpop.f32.mrf.mxu0 }
 0x100   : > { %366 = vmatmul.f32.gmra.mxu1 %v2327_v47  ;;  %v2351_v54 = vmul.f32 %v585_v50, %v2327_v47 }
 0x107   : > { %v2330_v48 = vpop.f32.mrf.mxu0 }
 0x108   : > { %369 = vmatmul.f32.gmra.mxu1 %v2330_v48  ;;  %v2347_v53 = vmul.f32 %v585_v50, %v2330_v48 }
 0x10f   : > { %v2339_v51 = vpop.f32.mrf.mxu0 }
 0x110   : > { %372 = vmatmul.f32.gmra.mxu1 %v2339_v51  ;;  %v2343_v52 = vmul.f32 %v585_v50, %v2339_v51 }
 0x112   : > { %602 = vmatpush.msrb.mxu0 %v2343_v52 }
 0x114   : > { %603 = vmatpush.msrb.mxu0 %v2347_v53 }
 0x115   : > { %v328_v55 = vpop.f32.mrf.mxu1 }
 0x116   : > { %376 = vxpose.xlu0.b32.start [1/16] (narrow) %v328_v55, 8  ;;  %604 = vmatpush.msrb.mxu0 %v2351_v54 }
 0x118   : > { %605 = vmatpush.msrb.mxu0 %v2355_v56 }
 0x11a   : > { %606 = vmatpush.msrb.mxu0 %v2359_v57 }
 0x11c   : > { %607 = vmatpush.msrb.mxu0 %v2363_v58 }
 0x11d   : > { %v331_v60 = vpop.f32.mrf.mxu1 }
 0x11e   : > { %377 = vxpose.xlu0.b32.cont [2/16] (narrow) %v331_v60, 8  ;;  %608 = vmatpush.msrb.mxu0 %v2367_v59 }
 0x120   : > { %609 = vmatpush.msrb.mxu0 %v2371_v61 }
 0x122   : > { %610 = vmatpush.msrb.mxu0 %v2375_v62 }
 0x124   : > { %611 = vmatpush.msrb.mxu0 %v2379_v63 }
 0x125   : > { %v334_v1 = vpop.f32.mrf.mxu1 }
 0x126   : > { %378 = vxpose.xlu0.b32.cont [3/16] (narrow) %v334_v1, 8  ;;  %612 = vmatpush.msrb.mxu0 %v2383_v0  ;;  %v2603_v1 = vld [vmem:[%s3372_s1 + $0x338] sm:$0xff] }
 0x127   : > { %3389 = vst [vmem:[#allocation8_spill] sm:$0xff] %v2603_v1 }
 0x128   : > { %613 = vmatpush.msrb.mxu0 %v2387_v2 }
 0x12a   : > { %614 = vmatpush.msrb.mxu0 %v2391_v3 }
 0x12c   : > { %615 = vmatpush.msrb.mxu0 %v2395_v4 }
 0x12d   : > { %v337_v6 = vpop.f32.mrf.mxu1 }
 0x12e   : > { %379 = vxpose.xlu0.b32.cont [4/16] (narrow) %v337_v6, 8  ;;  %616 = vmatpush.msrb.mxu0 %v2399_v5 }
 0x130   : > { %617 = vmatpush.msrb.mxu0 %v2403_v7 }
 0x132   : > { %736 = vmatpush.msra.mxu0 %v2409_v14 }
 0x134   : > { %737 = vmatpush.msra.mxu0 %v2414_v15 }
 0x135   : > { %v340_v8 = vpop.f32.mrf.mxu1 }
 0x136   : > { %380 = vxpose.xlu0.b32.cont [5/16] (narrow) %v340_v8, 8  ;;  %738 = vmatpush.msra.mxu0 %v2427_v16 }
 0x138   : > { %739 = vmatpush.msra.mxu0 %v2434_v18 }
 0x13a   : > { %740 = vmatpush.msra.mxu0 %v2439_v19 }
 0x13c   : > { %741 = vmatpush.msra.mxu0 %v2447_v20 }
 0x13d   : > { %v343_v9 = vpop.f32.mrf.mxu1 }
 0x13e   : > { %381 = vxpose.xlu0.b32.cont [6/16] (narrow) %v343_v9, 8  ;;  %742 = vmatpush.msra.mxu0 %v2460_v21  ;;  %v2612_v9 = vld [vmem:[%s3372_s1 + $0x340] sm:$0xff] }
 0x13f   : > { %3390 = vst [vmem:[#allocation9_spill] sm:$0xff] %v2612_v9 }
 0x140   : > { %743 = vmatpush.msra.mxu0 %v2469_v23 }
 0x142   : > { %744 = vmatpush.msra.mxu0 %v2474_v24 }
 0x144   : > { %745 = vmatpush.msra.mxu0 %v2482_v25 }
 0x145   : > { %v346_v10 = vpop.f32.mrf.mxu1 }
 0x146   : > { %382 = vxpose.xlu0.b32.cont [7/16] (narrow) %v346_v10, 8  ;;  %746 = vmatpush.msra.mxu0 %v2491_v26 }
 0x148   : > { %747 = vmatpush.msra.mxu0 %v2500_v27 }
 0x14a   : > { %748 = vmatpush.msra.mxu0 %v2509_v29 }
 0x14c   : > { %749 = vmatpush.msra.mxu0 %v2517_v30 }
 0x14d   : > { %v349_v11 = vpop.f32.mrf.mxu1 }
 0x14e   : > { %383 = vxpose.xlu0.b32.cont [8/16] (narrow) %v349_v11, 8  ;;  %750 = vmatpush.msra.mxu0 %v2526_v31 }
 0x150   : > { %751 = vmatpush.msra.mxu0 %v2535_v32 }
 0x155   : > { %v352_v12 = vpop.f32.mrf.mxu1 }
 0x156   : > { %384 = vxpose.xlu0.b32.cont [9/16] (narrow) %v352_v12, 8 }
 0x15d   : > { %v355_v13 = vpop.f32.mrf.mxu1 }
 0x15e   : > { %385 = vxpose.xlu0.b32.cont [10/16] (narrow) %v355_v13, 8 }
 0x165   : > { %v358_v17 = vpop.f32.mrf.mxu1 }
 0x166   : > { %386 = vxpose.xlu0.b32.cont [11/16] (narrow) %v358_v17, 8  ;;  %v990_v17 = vperm.slane %v2336_v49, 3 }
 0x16d   : > { %v361_v22 = vpop.f32.mrf.mxu1 }
 0x16e   : > { %387 = vxpose.xlu0.b32.cont [12/16] (narrow) %v361_v22, 8  ;;  %v1006_v22 = vmul.f32 %v990_v17, %v2339_v51 }
 0x175   : > { %v364_v28 = vpop.f32.mrf.mxu1 }
 0x176   : > { %388 = vxpose.xlu0.b32.cont [13/16] (narrow) %v364_v28, 8  ;;  %v1005_v28 = vmul.f32 %v990_v17, %v2330_v48 }
 0x17d   : > { %v367_v33 = vpop.f32.mrf.mxu1 }
 0x17e   : > { %389 = vxpose.xlu0.b32.cont [14/16] (narrow) %v367_v33, 8  ;;  %v1004_v33 = vmul.f32 %v990_v17, %v2327_v47 }
 0x185   : > { %v370_v50 = vpop.f32.mrf.mxu1 }
 0x186   : > { %390 = vxpose.xlu0.b32.cont [15/16] (narrow) %v370_v50, 8  ;;  %v1003_v50 = vmul.f32 %v990_v17, %v2324_v46 }
 0x18d   : > { %v373_v55 = vpop.f32.mrf.mxu1 }
 0x18e   : > { %391 = vxpose.xlu0.b32.end [16/16] (narrow) %v373_v55, 8  ;;  %v1002_v55 = vmul.f32 %v990_v17, %v2321_v45 }
 0x1ba   : > { %v2598_v60 = vpop.trf.xlu0 }
 0x1bb   : > { %v408_v6 = vperm.slane %v2598_v60, 4  ;;  %v505_v11 = vperm.slane %v2598_v60, 5 }
 0x1bd   : > { %v409_v8 = vmul.f32 %v408_v6, %v2603_v1  ;;  %v410_v10 = vmul.f32 %v408_v6, %v2612_v9  ;;  %v506_v12 = vmul.f32 %v505_v11, %v2603_v1  ;;  %v507_v13 = vmul.f32 %v505_v11, %v2612_v9 }
 0x1be   : > { %v1001_v6 = vmul.f32 %v990_v17, %v2318_v44  ;;  %v998_v11 = vmul.f32 %v990_v17, %v2309_v41  ;;  %v508_v1 = vperm.slane %v2598_v60, 1 }
 0x1bf   : > { %428 = vmatmul.f32.vlgmr.msra.gmra.mxu2 %v409_v8  ;;  %v1000_v8 = vmul.f32 %v990_v17, %v2315_v43 }
 0x1c0   : > { %1872 = vmatpush.msra.mxu2 %v2343_v52 }
 0x1c2   : > { %1874 = vmatpush.msra.mxu2 %v2347_v53 }
 0x1c4   : > { %1876 = vmatpush.msra.mxu2 %v2351_v54 }
 0x1c6   : > { %1878 = vmatpush.msra.mxu2 %v2355_v56 }
 0x1c7   : > { %431 = vmatmul.f32.gmra.mxu2 %v410_v10  ;;  %v999_v10 = vmul.f32 %v990_v17, %v2312_v42 }
 0x1c8   : > { %1880 = vmatpush.msra.mxu2 %v2359_v57 }
 0x1ca   : > { %1882 = vmatpush.msra.mxu2 %v2363_v58 }
 0x1cc   : > { %1884 = vmatpush.msra.mxu2 %v2367_v59 }
 0x1ce   : > { %1886 = vmatpush.msra.mxu2 %v2371_v61 }
 0x1cf   : > { %525 = vmatmul.f32.vlgmr.msrb.gmra.mxu2 %v506_v12  ;;  %v997_v12 = vmul.f32 %v990_v17, %v2306_v40 }
 0x1d0   : > { %1888 = vmatpush.msra.mxu2 %v2375_v62 }
 0x1d2   : > { %1890 = vmatpush.msra.mxu2 %v2379_v63 }
 0x1d4   : > { %1892 = vmatpush.msra.mxu2 %v2383_v0 }
 0x1d6   : > { %1894 = vmatpush.msra.mxu2 %v2387_v2 }
 0x1d7   : > { %528 = vmatmul.f32.gmra.mxu2 %v507_v13  ;;  %v996_v13 = vmul.f32 %v990_v17, %v2303_v39 }
 0x1d8   : > { %1896 = vmatpush.msra.mxu2 %v2391_v3 }
 0x1da   : > { %1898 = vmatpush.msra.mxu2 %v2395_v4 }
 0x1dc   : > { %1900 = vmatpush.msra.mxu2 %v2399_v5 }
 0x1de   : > { %1902 = vmatpush.msra.mxu2 %v2403_v7 }
 0x1e0   : > { %1007 = vmatpush.msrb.mxu2 %v1006_v22  ;;  %v995_v22 = vmul.f32 %v990_v17, %v2300_v38 }
 0x1e2   : > { %1008 = vmatpush.msrb.mxu2 %v1005_v28  ;;  %v994_v28 = vmul.f32 %v990_v17, %v2297_v37 }
 0x1e4   : > { %1009 = vmatpush.msrb.mxu2 %v1004_v33  ;;  %v993_v33 = vmul.f32 %v990_v17, %v2294_v36 }
 0x1e6   : > { %1010 = vmatpush.msrb.mxu2 %v1003_v50  ;;  %v992_v50 = vmul.f32 %v990_v17, %v2291_v35 }
 0x1e8   : > { %1011 = vmatpush.msrb.mxu2 %v1002_v55  ;;  %v991_v55 = vmul.f32 %v990_v17, %v2288_v34 }
 0x1ea   : > { %1012 = vmatpush.msrb.mxu2 %v1001_v6  ;;  %v411_v6 = vperm.slane %v2598_v60, 0 }
 0x1ec   : > { %1013 = vmatpush.msrb.mxu2 %v1000_v8 }
 0x1ee   : > { %1014 = vmatpush.msrb.mxu2 %v999_v10 }
 0x1f0   : > { %1015 = vmatpush.msrb.mxu2 %v998_v11 }
 0x1f2   : > { %1016 = vmatpush.msrb.mxu2 %v997_v12 }
 0x1f4   : > { %1017 = vmatpush.msrb.mxu2 %v996_v13 }
 0x1f6   : > { %1018 = vmatpush.msrb.mxu2 %v995_v22 }
 0x1f8   : > { %1019 = vmatpush.msrb.mxu2 %v994_v28 }
 0x1fa   : > { %1020 = vmatpush.msrb.mxu2 %v993_v33 }
 0x1fc   : > { %1021 = vmatpush.msrb.mxu2 %v992_v50 }
 0x1fe   : > { %1022 = vmatpush.msrb.mxu2 %v991_v55 }
 0x242   : > { %v429_v8 = vpop.f32.mrf.mxu2 }
 0x243   : > { %v430_v10 = vadd.f32 %v429_v8, %v411_v6 }
 0x245   : > { %v435_v11 = vmul.f32 0.2, %v430_v10 }
 0x247   : > { %v437_v12 = vmax.f32 %v430_v10, %v435_v11 }
 0x249   : > { %v439_v13 = vmin.f32 %v437_v12, 30.0 }
 0x24a   : > { %v432_v22 = vpop.f32.mrf.mxu2 }
 0x24b   : > { %v441_v9 = vmul.f32 1.442695, %v439_v13  ;;  %v433_v20 = vadd.f32 %v432_v22, %v411_v6 }
 0x24d   : > { %1947 = vpow2.f32 %v441_v9  ;;  %v436_v28 = vmul.f32 0.2, %v433_v20 }
 0x24f   : > { %v438_v14 = vmax.f32 %v433_v20, %v436_v28 }
 0x251   : > { %v440_v33 = vmin.f32 %v438_v14, 30.0 }
 0x252   : > { %v526_v50 = vpop.f32.mrf.mxu2 }
 0x253   : > { %v2651_v21 = vpop.eup %1947  ;;  %v443_v17 = vmul.f32 1.442695, %v440_v33  ;;  %v527_v55 = vadd.f32 %v526_v50, %v508_v1 }
 0x254   : > { %461 = vmatmul.f32.vlgmr.msra.gmra.mxu3 %v2651_v21 }
 0x255   : > { %1949 = vpow2.f32 %v443_v17  ;;  %v532_v8 = vmul.f32 0.2, %v527_v55  ;;  %1873 = vmatpush.msra.mxu3 %v2343_v52 }
 0x257   : > { %v534_v10 = vmax.f32 %v527_v55, %v532_v8  ;;  %1875 = vmatpush.msra.mxu3 %v2347_v53 }
 0x259   : > { %v536_v9 = vmin.f32 %v534_v10, 30.0  ;;  %1877 = vmatpush.msra.mxu3 %v2351_v54 }
 0x25a   : > { %v529_v14 = vpop.f32.mrf.mxu2 }
 0x25b   : > { %v2657_v20 = vpop.eup %1949  ;;  %v538_v6 = vmul.f32 1.442695, %v536_v9  ;;  %v530_v11 = vadd.f32 %v529_v14, %v508_v1  ;;  %1879 = vmatpush.msra.mxu3 %v2355_v56 }
 0x25c   : > { %464 = vmatmul.f32.gmra.mxu3 %v2657_v20 }
 0x25d   : > { %1951 = vpow2.f32 %v538_v6  ;;  %v533_v12 = vmul.f32 0.2, %v530_v11  ;;  %1881 = vmatpush.msra.mxu3 %v2359_v57  ;;  %v488_v57 = vperm.slane %v2336_v49, 0  ;;  %v812_v6 = vperm.slane %v2336_v49, 2 }
 0x25f   : > { %v535_v52 = vmax.f32 %v530_v11, %v533_v12  ;;  %1883 = vmatpush.msra.mxu3 %v2363_v58  ;;  %v504_v58 = vmul.f32 %v488_v57, %v2339_v51  ;;  %v493_v1 = vmul.f32 %v488_v57, %v2300_v38  ;;  %v492_v22 = vmul.f32 %v488_v57, %v2297_v37 }
 0x260   : > { %v491_v28 = vmul.f32 %v488_v57, %v2294_v36  ;;  %v490_v33 = vmul.f32 %v488_v57, %v2291_v35  ;;  %v489_v50 = vmul.f32 %v488_v57, %v2288_v34  ;;  %v828_v12 = vmul.f32 %v812_v6, %v2339_v51 }
 0x261   : > { %v537_v53 = vmin.f32 %v535_v52, 30.0  ;;  %1885 = vmatpush.msra.mxu3 %v2367_v59  ;;  %v503_v59 = vmul.f32 %v488_v57, %v2330_v48  ;;  %v827_v52 = vmul.f32 %v812_v6, %v2330_v48  ;;  %v824_v51 = vmul.f32 %v812_v6, %v2321_v45 }
 0x262   : > { %v823_v48 = vmul.f32 %v812_v6, %v2318_v44 }
 0x263   : > { %v1952_v54 = vpop.eup %1951  ;;  %v540_v13 = vmul.f32 1.442695, %v537_v53  ;;  %1887 = vmatpush.msra.mxu3 %v2371_v61  ;;  %v502_v61 = vmul.f32 %v488_v57, %v2327_v47 }
 0x264   : > { %558 = vmatmul.f32.vlgmr.msrb.gmra.mxu3 %v1952_v54 }
 0x265   : > { %1953 = vpow2.f32 %v540_v13  ;;  %1889 = vmatpush.msra.mxu3 %v2375_v62  ;;  %v501_v62 = vmul.f32 %v488_v57, %v2324_v46  ;;  %v826_v13 = vmul.f32 %v812_v6, %v2327_v47  ;;  %v822_v47 = vmul.f32 %v812_v6, %v2315_v43 }
 0x267   : > { %1891 = vmatpush.msra.mxu3 %v2379_v63  ;;  %v500_v63 = vmul.f32 %v488_v57, %v2321_v45 }
 0x269   : > { %1893 = vmatpush.msra.mxu3 %v2383_v0  ;;  %v499_v0 = vmul.f32 %v488_v57, %v2318_v44  ;;  %v817_v44 = vmul.f32 %v812_v6, %v2300_v38  ;;  %v813_v38 = vmul.f32 %v812_v6, %v2288_v34  ;;  %v3392_v34 = vld [vmem:[#allocation8_spill] sm:$0xff] }
 0x26b   : > { %v1954_v56 = vpop.eup %1953  ;;  %1895 = vmatpush.msra.mxu3 %v2387_v2  ;;  %v498_v2 = vmul.f32 %v488_v57, %v2315_v43  ;;  %v819_v43 = vmul.f32 %v812_v6, %v2306_v40 }
 0x26c   : > { %561 = vmatmul.f32.gmra.mxu3 %v1954_v56 }
 0x26d   : > { %1897 = vmatpush.msra.mxu3 %v2391_v3  ;;  %v497_v3 = vmul.f32 %v488_v57, %v2312_v42 }
 0x26f   : > { %1899 = vmatpush.msra.mxu3 %v2395_v4  ;;  %v496_v4 = vmul.f32 %v488_v57, %v2309_v41 }
 0x271   : > { %1901 = vmatpush.msra.mxu3 %v2399_v5  ;;  %v495_v5 = vmul.f32 %v488_v57, %v2306_v40  ;;  %v815_v40 = vmul.f32 %v812_v6, %v2294_v36  ;;  %v3391_v36 = vld [vmem:[#allocation7_spill] sm:$0xff] }
 0x273   : > { %1903 = vmatpush.msra.mxu3 %v2403_v7  ;;  %v494_v7 = vmul.f32 %v488_v57, %v2303_v39 }
 0x275   : > { %667 = vmatpush.msrb.mxu3 %v504_v58 }
 0x277   : > { %668 = vmatpush.msrb.mxu3 %v503_v59 }
 0x279   : > { %669 = vmatpush.msrb.mxu3 %v502_v61 }
 0x27b   : > { %670 = vmatpush.msrb.mxu3 %v501_v62  ;;  %v820_v62 = vmul.f32 %v812_v6, %v2309_v41  ;;  %v816_v41 = vmul.f32 %v812_v6, %v2297_v37 }
 0x27d   : > { %671 = vmatpush.msrb.mxu3 %v500_v63 }
 0x27f   : > { %672 = vmatpush.msrb.mxu3 %v499_v0 }
 0x281   : > { %673 = vmatpush.msrb.mxu3 %v498_v2 }
 0x283   : > { %674 = vmatpush.msrb.mxu3 %v497_v3 }
 0x285   : > { %675 = vmatpush.msrb.mxu3 %v496_v4 }
 0x287   : > { %676 = vmatpush.msrb.mxu3 %v495_v5 }
 0x289   : > { %677 = vmatpush.msrb.mxu3 %v494_v7 }
 0x28b   : > { %678 = vmatpush.msrb.mxu3 %v493_v1  ;;  %v3393_v1 = vld [vmem:[#allocation5_spill] sm:$0xff] }
 0x28d   : > { %679 = vmatpush.msrb.mxu3 %v492_v22 }
 0x28f   : > { %680 = vmatpush.msrb.mxu3 %v491_v28 }
 0x291   : > { %681 = vmatpush.msrb.mxu3 %v490_v33 }
 0x293   : > { %682 = vmatpush.msrb.mxu3 %v489_v50  ;;  %v3394_v50 = vld [vmem:[#allocation6_spill] sm:$0xff] }
 0x2d7   : > { %v2690_v17 = vpop.f32.mrf.mxu3 }
 0x2df   : > { %v2692_v55 = vpop.f32.mrf.mxu3 }
 0x2e7   : > { %v559_v8 = vpop.f32.mrf.mxu3 }
 0x2e8   : > { %1955 = vrcp.f32 %v559_v8  ;;  %v3395_v8 = vld [vmem:[#allocation9_spill] sm:$0xff] }
 0x2ee   : > { %v1956_v10 = vpop.eup %1955 }
 0x2ef   : > { %v2694_v9 = vmul.f32 %v1956_v10, %v1952_v54  ;;  %v562_v14 = vpop.f32.mrf.mxu3  ;;  %v825_v54 = vmul.f32 %v812_v6, %v2324_v46  ;;  %v821_v46 = vmul.f32 %v812_v6, %v2312_v42  ;;  %v818_v42 = vmul.f32 %v812_v6, %v2303_v39 }
 0x2f0   : > { %1957 = vrcp.f32 %v562_v14  ;;  %v814_v39 = vmul.f32 %v812_v6, %v2291_v35  ;;  %v732_v35 = vperm.slane %v2598_v60, 6 }
 0x2f1   : > { %v569_v11 = vmul.f32 %v2694_v9, %v2535_v32  ;;  %v575_v61 = vmul.f32 %v2694_v9, %v2482_v25  ;;  %v581_v45 = vmul.f32 %v2694_v9, %v2434_v18  ;;  %v573_v3 = vmul.f32 %v2694_v9, %v2500_v27 }
 0x2f2   : > { %v577_v4 = vmul.f32 %v2694_v9, %v2469_v23  ;;  %v583_v37 = vmul.f32 %v2694_v9, %v2414_v15  ;;  %1959 = vrcp.f32 %v2690_v17  ;;  %v733_v7 = vmul.f32 %v732_v35, %v3392_v34 }
 0x2f3   : > { %618 = vmatmul.f32.vlgmr.msrb.gmra.mxu0 %v569_v11  ;;  %1961 = vrcp.f32 %v2692_v55  ;;  %v579_v17 = vmul.f32 %v2694_v9, %v3394_v50  ;;  %v734_v10 = vmul.f32 %v732_v35, %v3395_v8 }
 0x2f4   : > { %829 = vmatpush.msrb.mxu0 %v828_v12 }
 0x2f6   : > { %v1958_v53 = vpop.eup %1957  ;;  %830 = vmatpush.msrb.mxu0 %v827_v52 }
 0x2f7   : > { %v568_v57 = vmul.f32 %v1958_v53, %v1954_v56  ;;  %v571_v56 = vmul.f32 %v2694_v9, %v2517_v30 }
 0x2f8   : > { %831 = vmatpush.msrb.mxu0 %v826_v13  ;;  %v1960_v28 = vpop.eup %1959 }
 0x2f9   : > { %v570_v58 = vmul.f32 %v568_v57, %v2526_v31  ;;  %v574_v49 = vmul.f32 %v568_v57, %v2491_v26  ;;  %v580_v59 = vmul.f32 %v568_v57, %v2439_v19  ;;  %v572_v63 = vmul.f32 %v568_v57, %v2509_v29  ;;  %v1962_v6 = vpop.eup %1961 }
 0x2fa   : > { %832 = vmatpush.msrb.mxu0 %v825_v54  ;;  %v576_v0 = vmul.f32 %v568_v57, %v2474_v24  ;;  %v582_v2 = vmul.f32 %v568_v57, %v2427_v16  ;;  %v578_v5 = vmul.f32 %v568_v57, %v3391_v36  ;;  %v584_v22 = vmul.f32 %v568_v57, %v3393_v1 }
 0x2fb   : > { %621 = vmatmul.f32.gmra.mxu0 %v570_v58  ;;  %633 = vmatmul.f32.vlgmr.msra.gmra.mxu2 %v574_v49  ;;  %v470_v33 = vmul.f32 %v1960_v28, %v2651_v21  ;;  %v471_v21 = vmul.f32 %v1962_v6, %v2657_v20 }
 0x2fc   : > { %651 = vmatmul.f32.vlgmr.msra.gmra.mxu3 %v580_v59  ;;  %833 = vmatpush.msrb.mxu0 %v824_v51 }
 0x2fd   : > { %v472_v14 = vmul.f32 %v470_v33, %v2535_v32  ;;  %v473_v55 = vmul.f32 %v471_v21, %v2526_v31  ;;  %v474_v9 = vmul.f32 %v470_v33, %v2517_v30  ;;  %v475_v20 = vmul.f32 %v471_v21, %v2509_v29 }
 0x2fe   : > { %834 = vmatpush.msrb.mxu0 %v823_v48  ;;  %v476_v11 = vmul.f32 %v470_v33, %v2500_v27  ;;  %v477_v12 = vmul.f32 %v471_v21, %v2491_v26  ;;  %v478_v52 = vmul.f32 %v470_v33, %v2482_v25  ;;  %v479_v53 = vmul.f32 %v471_v21, %v2474_v24 }
 0x2ff   : > { %v480_v13 = vmul.f32 %v470_v33, %v2469_v23  ;;  %v481_v57 = vmul.f32 %v471_v21, %v3391_v36  ;;  %v482_v58 = vmul.f32 %v470_v33, %v3394_v50  ;;  %v483_v59 = vmul.f32 %v471_v21, %v2439_v19 }
 0x300   : > { %835 = vmatpush.msrb.mxu0 %v822_v47  ;;  %v484_v48 = vmul.f32 %v470_v33, %v2434_v18 }
 0x302   : > { %836 = vmatpush.msrb.mxu0 %v821_v46  ;;  %v485_v46 = vmul.f32 %v471_v21, %v2427_v16 }
 0x303   : > { %624 = vmatmul.f32.gmra.mxu0 %v571_v56  ;;  %636 = vmatmul.f32.gmra.mxu2 %v575_v61  ;;  %v486_v61 = vmul.f32 %v470_v33, %v2414_v15 }
 0x304   : > { %654 = vmatmul.f32.gmra.mxu3 %v581_v45  ;;  %837 = vmatpush.msrb.mxu0 %v820_v62  ;;  %v735_v45 = vperm.slane %v2598_v60, 2 }
 0x306   : > { %838 = vmatpush.msrb.mxu0 %v819_v43 }
 0x308   : > { %839 = vmatpush.msrb.mxu0 %v818_v42  ;;  %v487_v42 = vmul.f32 %v471_v21, %v3393_v1 }
 0x30a   : > { %840 = vmatpush.msrb.mxu0 %v817_v44 }
 0x30b   : > { %627 = vmatmul.f32.gmra.mxu0 %v572_v63  ;;  %639 = vmatmul.f32.gmra.mxu2 %v576_v0 }
 0x30c   : > { %657 = vmatmul.f32.gmra.mxu3 %v582_v2  ;;  %841 = vmatpush.msrb.mxu0 %v816_v41 }
 0x30e   : > { %842 = vmatpush.msrb.mxu0 %v815_v40 }
 0x310   : > { %843 = vmatpush.msrb.mxu0 %v814_v39 }
 0x312   : > { %844 = vmatpush.msrb.mxu0 %v813_v38 }
 0x313   : > { %630 = vmatmul.f32.gmra.mxu0 %v573_v3  ;;  %642 = vmatmul.f32.gmra.mxu2 %v577_v4 }
 0x314   : > { %660 = vmatmul.f32.gmra.mxu3 %v583_v37 }
 0x31b   : > { %645 = vmatmul.f32.gmra.mxu2 %v578_v5  ;;  %752 = vmatmul.f32.vlgmr.msra.gmra.mxu0 %v733_v7  ;;  %v910_v5 = vperm.slane %v2598_v60, 7 }
 0x31c   : > { %663 = vmatmul.f32.gmra.mxu3 %v584_v22  ;;  %1400 = vmatpush.msra.mxu0 %v3393_v1 }
 0x31d   : > { %v911_v7 = vmul.f32 %v910_v5, %v3392_v34  ;;  %v912_v22 = vmul.f32 %v910_v5, %v3395_v8 }
 0x31e   : > { %1401 = vmatpush.msra.mxu0 %v2414_v15 }
 0x320   : > { %1402 = vmatpush.msra.mxu0 %v2427_v16 }
 0x322   : > { %1403 = vmatpush.msra.mxu0 %v2434_v18 }
 0x323   : > { %648 = vmatmul.f32.gmra.mxu2 %v579_v17  ;;  %755 = vmatmul.f32.gmra.mxu0 %v734_v10 }
 0x324   : > { %683 = vmatmul.f32.vlgmr.msrb.gmra.mxu3 %v472_v14  ;;  %1404 = vmatpush.msra.mxu0 %v2439_v19  ;;  %v913_v14 = vperm.slane %v2598_v60, 3 }
 0x326   : > { %1405 = vmatpush.msra.mxu0 %v3394_v50 }
 0x328   : > { %1406 = vmatpush.msra.mxu0 %v3391_v36 }
 0x32a   : > { %1407 = vmatpush.msra.mxu0 %v2469_v23 }
 0x32c   : > { %686 = vmatmul.f32.gmra.mxu3 %v473_v55  ;;  %1408 = vmatpush.msra.mxu0 %v2474_v24 }
 0x32e   : > { %1409 = vmatpush.msra.mxu0 %v2482_v25 }
 0x330   : > { %1410 = vmatpush.msra.mxu0 %v2491_v26 }
 0x332   : > { %1411 = vmatpush.msra.mxu0 %v2500_v27 }
 0x334   : > { %689 = vmatmul.f32.gmra.mxu3 %v474_v9  ;;  %1412 = vmatpush.msra.mxu0 %v2509_v29 }
 0x336   : > { %1413 = vmatpush.msra.mxu0 %v2517_v30 }
 0x338   : > { %1414 = vmatpush.msra.mxu0 %v2526_v31 }
 0x33a   : > { %1415 = vmatpush.msra.mxu0 %v2535_v32 }
 0x33c   : > { %692 = vmatmul.f32.gmra.mxu3 %v475_v20 }
 0x344   : > { %695 = vmatmul.f32.gmra.mxu3 %v476_v11 }
 0x34c   : > { %698 = vmatmul.f32.gmra.mxu3 %v477_v12 }
 0x354   : > { %701 = vmatmul.f32.gmra.mxu3 %v478_v52 }
 0x35c   : > { %704 = vmatmul.f32.gmra.mxu3 %v479_v53 }
 0x364   : > { %707 = vmatmul.f32.gmra.mxu3 %v480_v13 }
 0x36c   : > { %710 = vmatmul.f32.gmra.mxu3 %v481_v57 }
 0x370   : > { %v2770_v54 = vpop.f32.mrf.mxu0 }
 0x374   : > { %713 = vmatmul.f32.gmra.mxu3 %v482_v58 }
 0x378   : > { %v2773_v49 = vpop.f32.mrf.mxu0 }
 0x37c   : > { %716 = vmatmul.f32.gmra.mxu3 %v483_v59 }
 0x380   : > { %v2776_v51 = vpop.f32.mrf.mxu0 }
 0x384   : > { %719 = vmatmul.f32.gmra.mxu3 %v484_v48 }
 0x388   : > { %v2779_v47 = vpop.f32.mrf.mxu0 }
 0x38c   : > { %722 = vmatmul.f32.gmra.mxu3 %v485_v46 }
 0x390   : > { %v2782_v56 = vpop.f32.mrf.mxu0 }
 0x394   : > { %725 = vmatmul.f32.gmra.mxu3 %v486_v61 }
 0x398   : > { %v753_v62 = vpop.f32.mrf.mxu0 }
 0x399   : > { %v754_v43 = vadd.f32 %v753_v62, %v735_v45 }
 0x39b   : > { %v759_v44 = vmul.f32 0.2, %v754_v43 }
 0x39c   : > { %728 = vmatmul.f32.gmra.mxu3 %v487_v42  ;;  %v2873_v42 = vld [vmem:[%s3372_s1 + $0x328] sm:$0xff] }
 0x39d   : > { %v761_v63 = vmax.f32 %v754_v43, %v759_v44 }
 0x39f   : > { %v763_v0 = vmin.f32 %v761_v63, 30.0  ;;  %v2880_v63 = vld [vmem:[%s3372_s1 + $0x330] sm:$0xff] }
 0x3a0   : > { %v756_v2 = vpop.f32.mrf.mxu0 }
 0x3a1   : > { %v765_v41 = vmul.f32 1.442695, %v763_v0  ;;  %v757_v40 = vadd.f32 %v756_v2, %v735_v45 }
 0x3a3   : > { %1963 = vpow2.f32 %v765_v41  ;;  %v760_v39 = vmul.f32 0.2, %v757_v40 }
 0x3a5   : > { %v762_v38 = vmax.f32 %v757_v40, %v760_v39 }
 0x3a7   : > { %v764_v3 = vmin.f32 %v762_v38, 30.0 }
 0x3a9   : > { %v1964_v4 = vpop.eup %1963  ;;  %v767_v37 = vmul.f32 1.442695, %v764_v3 }
 0x3aa   : > { %785 = vmatmul.f32.vlgmr.msrb.gmra.mxu1 %v1964_v4 }
 0x3ab   : > { %1965 = vpow2.f32 %v767_v37  ;;  %947 = vmatpush.msrb.mxu1 %v3393_v1 }
 0x3ad   : > { %948 = vmatpush.msrb.mxu1 %v2414_v15 }
 0x3af   : > { %949 = vmatpush.msrb.mxu1 %v2427_v16 }
 0x3b1   : > { %v1966_v35 = vpop.eup %1965  ;;  %950 = vmatpush.msrb.mxu1 %v2434_v18 }
 0x3b2   : > { %788 = vmatmul.f32.gmra.mxu1 %v1966_v35 }
 0x3b3   : > { %951 = vmatpush.msrb.mxu1 %v2439_v19 }
 0x3b5   : > { %952 = vmatpush.msrb.mxu1 %v3394_v50 }
 0x3b7   : > { %953 = vmatpush.msrb.mxu1 %v3391_v36 }
 0x3b9   : > { %954 = vmatpush.msrb.mxu1 %v2469_v23 }
 0x3ba   : > { %930 = vmatmul.f32.vlgmr.msra.gmra.mxu1 %v911_v7 }
 0x3bb   : > { %955 = vmatpush.msrb.mxu1 %v2474_v24 }
 0x3bd   : > { %956 = vmatpush.msrb.mxu1 %v2482_v25 }
 0x3bf   : > { %957 = vmatpush.msrb.mxu1 %v2491_v26 }
 0x3c1   : > { %958 = vmatpush.msrb.mxu1 %v2500_v27 }
 0x3c2   : > { %933 = vmatmul.f32.gmra.mxu1 %v912_v22  ;;  %v2905_v22 = vpop.f32.mrf.mxu3 }
 0x3c3   : > { %959 = vmatpush.msrb.mxu1 %v2509_v29 }
 0x3c5   : > { %960 = vmatpush.msrb.mxu1 %v2517_v30 }
 0x3c7   : > { %961 = vmatpush.msrb.mxu1 %v2526_v31 }
 0x3c9   : > { %962 = vmatpush.msrb.mxu1 %v2535_v32 }
 0x427   : > { %v786_v34 = vpop.f32.mrf.mxu1 }
 0x428   : > { %1967 = vrcp.f32 %v786_v34 }
 0x42e   : > { %v1968_v28 = vpop.eup %1967 }
 0x42f   : > { %v2806_v33 = vmul.f32 %v1968_v28, %v1964_v4  ;;  %v789_v17 = vpop.f32.mrf.mxu1  ;;  %v2921_v28 = vpop.f32.mrf.mxu3 }
 0x430   : > { %1969 = vrcp.f32 %v789_v17 }
 0x431   : > { %v796_v8 = vmul.f32 %v2806_v33, %v2535_v32  ;;  %v800_v59 = vmul.f32 %v2806_v33, %v2500_v27  ;;  %v802_v46 = vmul.f32 %v2806_v33, %v2482_v25  ;;  %v804_v45 = vmul.f32 %v2806_v33, %v2469_v23 }
 0x432   : > { %v810_v44 = vmul.f32 %v2873_v42, %v2806_v33 }
 0x433   : > { %845 = vmatmul.f32.vlgmr.msrb.gmra.mxu0 %v796_v8 }
 0x434   : > { %1433 = vmatpush.msrb.mxu0 %v3393_v1 }
 0x436   : > { %v1970_v10 = vpop.eup %1969  ;;  %1434 = vmatpush.msrb.mxu0 %v2414_v15 }
 0x437   : > { %v2813_v6 = vmul.f32 %v1970_v10, %v1966_v35  ;;  %v931_v21 = vpop.f32.mrf.mxu1  ;;  %v2930_v8 = vpop.f32.mrf.mxu3  ;;  %v2935_v10 = vld [vmem:[%s3372_s1 + $0x300] sm:$0xff] }
 0x438   : > { %v932_v55 = vadd.f32 %v931_v21, %v913_v14  ;;  %1435 = vmatpush.msrb.mxu0 %v2427_v16  ;;  %v798_v16 = vmul.f32 %v2806_v33, %v2517_v30 }
 0x439   : > { %v797_v9 = vmul.f32 %v2813_v6, %v2526_v31  ;;  %v799_v57 = vmul.f32 %v2813_v6, %v2509_v29  ;;  %v801_v48 = vmul.f32 %v2813_v6, %v2491_v26  ;;  %v803_v61 = vmul.f32 %v2813_v6, %v2474_v24 }
 0x43a   : > { %v937_v20 = vmul.f32 0.2, %v932_v55  ;;  %1436 = vmatpush.msrb.mxu0 %v2434_v18  ;;  %v805_v62 = vmul.f32 %v2813_v6, %v3391_v36  ;;  %v811_v0 = vmul.f32 %v2880_v63, %v2813_v6 }
 0x43b   : > { %848 = vmatmul.f32.gmra.mxu0 %v797_v9 }
 0x43c   : > { %v939_v11 = vmax.f32 %v932_v55, %v937_v20  ;;  %1437 = vmatpush.msrb.mxu0 %v2439_v19  ;;  %v2946_v55 = vld [vmem:[%s3372_s1 + $0x308] sm:$0xff]  ;;  %v1217_v20 = vld [vmem:[%s3372_s1 + $0x110] sm:$0xff] }
 0x43d   : > { %1218 = vmatpush.msra.mxu3 %v1217_v20 }
 0x43e   : > { %v941_v1 = vmin.f32 %v939_v11, 30.0  ;;  %1438 = vmatpush.msrb.mxu0 %v3394_v50 }
 0x43f   : > { %v934_v15 = vpop.f32.mrf.mxu1  ;;  %v2941_v21 = vpop.f32.mrf.mxu3 }
 0x440   : > { %v943_v60 = vmul.f32 1.442695, %v941_v1  ;;  %v935_v12 = vadd.f32 %v934_v15, %v913_v14  ;;  %1439 = vmatpush.msrb.mxu0 %v3391_v36 }
 0x442   : > { %1971 = vpow2.f32 %v943_v60  ;;  %v938_v52 = vmul.f32 0.2, %v935_v12  ;;  %1440 = vmatpush.msrb.mxu0 %v2469_v23  ;;  %v2859_v23 = vld [vmem:[%s3372_s1 + $0x318] sm:$0xff]  ;;  %v1216_v60 = vld [vmem:[%s3372_s1 + $0x108] sm:$0xff] }
 0x443   : > { %851 = vmatmul.f32.gmra.mxu0 %v798_v16  ;;  %v808_v36 = vmul.f32 %v2859_v23, %v2806_v33  ;;  %1219 = vmatpush.msra.mxu3 %v1216_v60  ;;  %v1214_v16 = vld [vmem:[%s3372_s1 + $0xf8] sm:$0xff] }
 0x444   : > { %v940_v18 = vmax.f32 %v935_v12, %v938_v52  ;;  %1441 = vmatpush.msrb.mxu0 %v2474_v24  ;;  %v1215_v12 = vld [vmem:[%s3372_s1 + $0x100] sm:$0xff]  ;;  %v1213_v52 = vld [vmem:[%s3372_s1 + $0xf0] sm:$0xff] }
 0x445   : > { %1220 = vmatpush.msra.mxu3 %v1215_v12 }
 0x446   : > { %v942_v19 = vmin.f32 %v940_v18, 30.0  ;;  %1442 = vmatpush.msrb.mxu0 %v2482_v25  ;;  %v2852_v25 = vld [vmem:[%s3372_s1 + $0x310] sm:$0xff] }
 0x447   : > { %v807_v24 = vmul.f32 %v2852_v25, %v2813_v6  ;;  %v2955_v1 = vpop.f32.mrf.mxu3  ;;  %1221 = vmatpush.msra.mxu3 %v1214_v16 }
 0x448   : > { %v1972_v53 = vpop.eup %1971  ;;  %v945_v13 = vmul.f32 1.442695, %v942_v19  ;;  %1443 = vmatpush.msrb.mxu0 %v2491_v26  ;;  %v806_v26 = vmul.f32 %v2806_v33, %v3394_v50  ;;  %v2866_v50 = vld [vmem:[%s3372_s1 + $0x320] sm:$0xff]  ;;  %v2926_v33 = vld [vmem:[%s3372_s1 + $0x2f8] sm:$0xff] }
 0x449   : > { %963 = vmatmul.f32.vlgmr.msrb.gmra.mxu1 %v1972_v53  ;;  %v809_v43 = vmul.f32 %v2866_v50, %v2813_v6  ;;  %v2939_v6 = vpop.f32.mrf.mxu2  ;;  %1222 = vmatpush.msra.mxu3 %v1213_v52 }
 0x44a   : > { %1973 = vpow2.f32 %v945_v13  ;;  %1444 = vmatpush.msrb.mxu0 %v2500_v27 }
 0x44b   : > { %854 = vmatmul.f32.gmra.mxu0 %v799_v57 }
 0x44c   : > { %1445 = vmatpush.msrb.mxu0 %v2509_v29 }
 0x44e   : > { %1446 = vmatpush.msrb.mxu0 %v2517_v30 }
 0x44f   : > { %v684_v13 = vpop.f32.mrf.mxu3 }
 0x450   : > { %v1974_v58 = vpop.eup %1973  ;;  %1447 = vmatpush.msrb.mxu0 %v2526_v31 }
 0x451   : > { %966 = vmatmul.f32.gmra.mxu1 %v1974_v58  ;;  %v2953_v11 = vpop.f32.mrf.mxu2 }
 0x452   : > { %1448 = vmatpush.msrb.mxu0 %v2535_v32 }
 0x453   : > { %857 = vmatmul.f32.gmra.mxu0 %v800_v59 }
 0x459   : > { %v2971_v18 = vpop.f32.mrf.mxu2 }
 0x45b   : > { %860 = vmatmul.f32.gmra.mxu0 %v801_v48  ;;  %v1210_v48 = vld [vmem:[%s3372_s1 + $0xd8] sm:$0xff] }
 0x463   : > { %863 = vmatmul.f32.gmra.mxu0 %v802_v46  ;;  %v2986_v46 = vpop.f32.mrf.mxu2 }
 0x46b   : > { %866 = vmatmul.f32.gmra.mxu0 %v803_v61  ;;  %v1209_v61 = vld [vmem:[%s3372_s1 + $0xd0] sm:$0xff] }
 0x473   : > { %869 = vmatmul.f32.gmra.mxu0 %v804_v45  ;;  %v687_v45 = vpop.f32.mrf.mxu3 }
 0x47b   : > { %872 = vmatmul.f32.gmra.mxu0 %v805_v62  ;;  %v1208_v62 = vld [vmem:[%s3372_s1 + $0xc8] sm:$0xff] }
 0x483   : > { %875 = vmatmul.f32.gmra.mxu0 %v806_v26 }
 0x48b   : > { %878 = vmatmul.f32.gmra.mxu0 %v807_v24  ;;  %v1207_v24 = vld [vmem:[%s3372_s1 + $0xc0] sm:$0xff] }
 0x493   : > { %881 = vmatmul.f32.gmra.mxu0 %v808_v36 }
 0x49b   : > { %884 = vmatmul.f32.gmra.mxu0 %v809_v43  ;;  %v1206_v43 = vld [vmem:[%s3372_s1 + $0xb8] sm:$0xff] }
 0x4a3   : > { %887 = vmatmul.f32.gmra.mxu0 %v810_v44  ;;  %v1205_v44 = vld [vmem:[%s3372_s1 + $0xb0] sm:$0xff] }
 0x4ab   : > { %890 = vmatmul.f32.gmra.mxu0 %v811_v0  ;;  %v1204_v0 = vld [vmem:[%s3372_s1 + $0xa8] sm:$0xff] }
 0x4b0   : > { %v846_v57 = vpop.f32.mrf.mxu0 }
 0x4b8   : > { %v849_v26 = vpop.f32.mrf.mxu0 }
 0x4c6   : > { %v964_v2 = vpop.f32.mrf.mxu1 }
 0x4c7   : > { %1975 = vrcp.f32 %v964_v2  ;;  %v3008_v2 = vpop.f32.mrf.mxu2 }
 0x4cd   : > { %v1976_v41 = vpop.eup %1975 }
 0x4ce   : > { %v2884_v40 = vmul.f32 %v1976_v41, %v1972_v53  ;;  %v967_v39 = vpop.f32.mrf.mxu1  ;;  %v1212_v53 = vld [vmem:[%s3372_s1 + $0xe8] sm:$0xff]  ;;  %v690_v41 = vpop.f32.mrf.mxu3 }
 0x4cf   : > { %1977 = vrcp.f32 %v967_v39  ;;  %1223 = vmatpush.msra.mxu3 %v1212_v53  ;;  %v852_v39 = vpop.f32.mrf.mxu0 }
 0x4d0   : > { %v974_v38 = vmul.f32 %v2884_v40, %v2535_v32  ;;  %v976_v35 = vmul.f32 %v2884_v40, %v2517_v30  ;;  %v978_v7 = vmul.f32 %v2884_v40, %v2500_v27  ;;  %v2901_v32 = vld [vmem:[%s3372_s1 + $0x2e0] sm:$0xff]  ;;  %v2917_v30 = vld [vmem:[%s3372_s1 + $0x2f0] sm:$0xff]  ;;  %v982_v17 = vmul.f32 %v2926_v33, %v2884_v40 }
 0x4d1   : > { %v984_v9 = vmul.f32 %v2946_v55, %v2884_v40  ;;  %v986_v19 = vmul.f32 %v2859_v23, %v2884_v40  ;;  %v988_v36 = vmul.f32 %v2873_v42, %v2884_v40 }
 0x4d2   : > { %1023 = vmatmul.f32.vlgmr.msrb.gmra.mxu2 %v974_v38 }
 0x4d5   : > { %v1978_v3 = vpop.eup %1977 }
 0x4d6   : > { %v2888_v4 = vmul.f32 %v1978_v3, %v1974_v58  ;;  %v1211_v58 = vld [vmem:[%s3372_s1 + $0xe0] sm:$0xff]  ;;  %v1202_v3 = vld [vmem:[%s3372_s1 + $0x98] sm:$0xff] }
 0x4d7   : > { %1224 = vmatpush.msra.mxu3 %v1211_v58 }
 0x4d8   : > { %v975_v37 = vmul.f32 %v2888_v4, %v2526_v31  ;;  %v977_v5 = vmul.f32 %v2888_v4, %v2509_v29  ;;  %v979_v31 = vmul.f32 %v2901_v32, %v2888_v4  ;;  %v2910_v29 = vld [vmem:[%s3372_s1 + $0x2e8] sm:$0xff]  ;;  %v981_v34 = vmul.f32 %v2917_v30, %v2888_v4 }
 0x4d9   : > { %v980_v27 = vmul.f32 %v2910_v29, %v2884_v40  ;;  %v983_v14 = vmul.f32 %v2935_v10, %v2888_v4  ;;  %v985_v15 = vmul.f32 %v2852_v25, %v2888_v4  ;;  %v987_v59 = vmul.f32 %v2866_v50, %v2888_v4  ;;  %1225 = vmatpush.msra.mxu3 %v1210_v48  ;;  %v1203_v40 = vld [vmem:[%s3372_s1 + $0xa0] sm:$0xff] }
 0x4da   : > { %1026 = vmatmul.f32.gmra.mxu2 %v975_v37  ;;  %v989_v38 = vmul.f32 %v2880_v63, %v2888_v4  ;;  %v3018_v37 = vpop.f32.mrf.mxu2 }
 0x4db   : > { %1226 = vmatpush.msra.mxu3 %v1209_v61 }
 0x4dd   : > { %1227 = vmatpush.msra.mxu3 %v1208_v62 }
 0x4df   : > { %1228 = vmatpush.msra.mxu3 %v1207_v24 }
 0x4e1   : > { %1229 = vmatpush.msra.mxu3 %v1206_v43 }
 0x4e2   : > { %1029 = vmatmul.f32.gmra.mxu2 %v976_v35  ;;  %v693_v35 = vpop.f32.mrf.mxu3 }
 0x4e3   : > { %1230 = vmatpush.msra.mxu3 %v1205_v44  ;;  %v694_v24 = vadd.f32 %v693_v35, %v2779_v47 }
 0x4e5   : > { %1231 = vmatpush.msra.mxu3 %v1204_v0 }
 0x4e7   : > { %1232 = vmatpush.msra.mxu3 %v1203_v40 }
 0x4e9   : > { %1233 = vmatpush.msra.mxu3 %v1202_v3 }
 0x4ea   : > { %1032 = vmatmul.f32.gmra.mxu2 %v977_v5  ;;  %v855_v5 = vpop.f32.mrf.mxu0 }
 0x4f2   : > { %1035 = vmatmul.f32.gmra.mxu2 %v978_v7  ;;  %v685_v7 = vadd.f32 %v684_v13, %v2770_v54 }
 0x4fa   : > { %1038 = vmatmul.f32.gmra.mxu2 %v979_v31  ;;  %v894_v31 = vadd.f32 %v846_v57, %v685_v7 }
 0x502   : > { %1041 = vmatmul.f32.gmra.mxu2 %v980_v27  ;;  %v3024_v27 = vld [vmem:[%s3372_s1 + $0x10] ss:$0 sm:$0xff] }
 0x50a   : > { %1044 = vmatmul.f32.gmra.mxu2 %v981_v34 }
 0x512   : > { %1047 = vmatmul.f32.gmra.mxu2 %v982_v17 }
 0x51a   : > { %1050 = vmatmul.f32.gmra.mxu2 %v983_v14  ;;  %v696_v14 = vpop.f32.mrf.mxu3 }
 0x522   : > { %1053 = vmatmul.f32.gmra.mxu2 %v984_v9  ;;  %v688_v9 = vadd.f32 %v687_v45, %v2773_v49  ;;  %v699_v13 = vpop.f32.mrf.mxu3 }
 0x524   : > { %v895_v60 = vadd.f32 %v849_v26, %v688_v9 }
 0x52a   : > { %1056 = vmatmul.f32.gmra.mxu2 %v985_v15  ;;  %v858_v15 = vpop.f32.mrf.mxu0  ;;  %v702_v0 = vpop.f32.mrf.mxu3 }
 0x532   : > { %1059 = vmatmul.f32.gmra.mxu2 %v986_v19  ;;  %v691_v19 = vadd.f32 %v690_v41, %v2776_v51  ;;  %v861_v48 = vpop.f32.mrf.mxu0  ;;  %v897_v51 = vadd.f32 %v855_v5, %v694_v24 }
 0x534   : > { %v896_v58 = vadd.f32 %v852_v39, %v691_v19 }
 0x53a   : > { %1062 = vmatmul.f32.gmra.mxu2 %v987_v59 }
 0x542   : > { %1065 = vmatmul.f32.gmra.mxu2 %v988_v36 }
 0x54a   : > { %1068 = vmatmul.f32.gmra.mxu2 %v989_v38  ;;  %v864_v38 = vpop.f32.mrf.mxu0 }
 0x555   : > { %v1024_v34 = vpop.f32.mrf.mxu2 }
 0x556   : > { %v1072_v4 = vadd.f32 %v1024_v34, %v894_v31  ;;  %v697_v31 = vadd.f32 %v696_v14, %v2782_v56 }
 0x558   : > { %v1090_v17 = vadd.f32 %v3024_v27, %v1072_v4  ;;  %v898_v47 = vadd.f32 %v858_v15, %v697_v31 }
 0x55a   : > { %v1122_v20 = vmin.f32 %v1090_v17, 0.0  ;;  %vm1106_vm1 = vcmp.gt.f32.partialorder %v1090_v17, 0.0 }
 0x55c   : > { %v1138_v12 = vmul.f32 1.442695, %v1122_v20  ;;  %v705_v20 = vpop.f32.mrf.mxu3 }
 0x55d   : > { %v1027_v16 = vpop.f32.mrf.mxu2 }
 0x55e   : > { %1979 = vpow2.f32 %v1138_v12  ;;  %v1073_v54 = vadd.f32 %v1027_v16, %v895_v60  ;;  %v867_v16 = vpop.f32.mrf.mxu0 }
 0x560   : > { %v1091_v52 = vadd.f32 %v3024_v27, %v1073_v54  ;;  %v700_v54 = vadd.f32 %v699_v13, %v2939_v6 }
 0x562   : > { %v1123_v53 = vmin.f32 %v1091_v52, 0.0  ;;  %vm1107_vm2 = vcmp.gt.f32.partialorder %v1091_v52, 0.0  ;;  %v899_v56 = vadd.f32 %v861_v48, %v700_v54 }
 0x564   : > { %v1980_v57 = vpop.eup %1979  ;;  %v1140_v59 = vmul.f32 1.442695, %v1123_v53 }
 0x565   : > { %v1030_v61 = vpop.f32.mrf.mxu2  ;;  %v1836_v62 = vadd.f32 -1.0, %v1980_v57 }
 0x566   : > { %v1074_v49 = vadd.f32 %v1030_v61, %v896_v58  ;;  %1981 = vpow2.f32 %v1140_v59  ;;  %v708_v61 = vpop.f32.mrf.mxu3 }
 0x567   : > { %v1186_v45 = vsel %vm1106_vm1, %v1090_v17, %v1836_v62  ;;  %v703_v62 = vadd.f32 %v702_v0, %v2953_v11 }
 0x568   : > { %v1092_v26 = vadd.f32 %v3024_v27, %v1074_v49  ;;  %1234 = vmatmul.f32.vlgmr.msra.gmra.mxu3 %v1186_v45  ;;  %v870_v45 = vpop.f32.mrf.mxu0 }
 0x569   : > { %v900_v6 = vadd.f32 %v864_v38, %v703_v62 }
 0x56a   : > { %v1124_v36 = vmin.f32 %v1092_v26, 0.0  ;;  %vm1108_vm3 = vcmp.gt.f32.partialorder %v1092_v26, 0.0 }
 0x56c   : > { %v1982_v43 = vpop.eup %1981  ;;  %v1142_v44 = vmul.f32 1.442695, %v1124_v36 }
 0x56d   : > { %v1033_v41 = vpop.f32.mrf.mxu2  ;;  %v1837_v40 = vadd.f32 -1.0, %v1982_v43 }
 0x56e   : > { %v1075_v39 = vadd.f32 %v1033_v41, %v897_v51  ;;  %1983 = vpow2.f32 %v1142_v44  ;;  %v706_v44 = vadd.f32 %v705_v20, %v2971_v18 }
 0x56f   : > { %v1187_v3 = vsel %vm1107_vm2, %v1091_v52, %v1837_v40  ;;  %v711_v40 = vpop.f32.mrf.mxu3 }
 0x570   : > { %v1093_v7 = vadd.f32 %v3024_v27, %v1075_v39  ;;  %1237 = vmatmul.f32.gmra.mxu3 %v1187_v3  ;;  %v901_v11 = vadd.f32 %v867_v16, %v706_v44  ;;  %v873_v3 = vpop.f32.mrf.mxu0 }
 0x572   : > { %v1125_v34 = vmin.f32 %v1093_v7, 0.0  ;;  %vm1109_vm4 = vcmp.gt.f32.partialorder %v1093_v7, 0.0 }
 0x574   : > { %v1984_v4 = vpop.eup %1983  ;;  %v1144_v35 = vmul.f32 1.442695, %v1125_v34 }
 0x575   : > { %v1036_v17 = vpop.f32.mrf.mxu2  ;;  %v1838_v5 = vadd.f32 -1.0, %v1984_v4 }
 0x576   : > { %v1076_v9 = vadd.f32 %v1036_v17, %v898_v47  ;;  %1985 = vpow2.f32 %v1144_v35  ;;  %v709_v47 = vadd.f32 %v708_v61, %v2986_v46 }
 0x577   : > { %v1188_v60 = vsel %vm1108_vm3, %v1092_v26, %v1838_v5 }
 0x578   : > { %v1094_v12 = vadd.f32 %v3024_v27, %v1076_v9  ;;  %1240 = vmatmul.f32.gmra.mxu3 %v1188_v60  ;;  %v902_v18 = vadd.f32 %v870_v45, %v709_v47  ;;  %v714_v9 = vpop.f32.mrf.mxu3  ;;  %v876_v16 = vpop.f32.mrf.mxu0 }
 0x579   : > { %v715_v45 = vadd.f32 %v714_v9, %v3018_v37 }
 0x57a   : > { %v1126_v52 = vmin.f32 %v1094_v12, 0.0  ;;  %vm1110_vm5 = vcmp.gt.f32.partialorder %v1094_v12, 0.0 }
 0x57c   : > { %v1986_v19 = vpop.eup %1985  ;;  %v1146_v14 = vmul.f32 1.442695, %v1126_v52 }
 0x57d   : > { %v1039_v53 = vpop.f32.mrf.mxu2  ;;  %v1839_v15 = vadd.f32 -1.0, %v1986_v19  ;;  %v712_v19 = vadd.f32 %v711_v40, %v3008_v2  ;;  %v904_v2 = vadd.f32 %v876_v16, %v715_v45 }
 0x57e   : > { %v1077_v57 = vadd.f32 %v1039_v53, %v899_v56  ;;  %1987 = vpow2.f32 %v1146_v14 }
 0x57f   : > { %v1189_v58 = vsel %vm1109_vm4, %v1093_v7, %v1839_v15  ;;  %v903_v46 = vadd.f32 %v873_v3, %v712_v19  ;;  %v1293_v19 = vld [vmem:[%s3372_s1 + $0x170] sm:$0xff] }
 0x580   : > { %v1095_v59 = vadd.f32 %v3024_v27, %v1077_v57  ;;  %1243 = vmatmul.f32.gmra.mxu3 %v1189_v58 }
 0x582   : > { %v1127_v49 = vmin.f32 %v1095_v59, 0.0  ;;  %vm1111_vm6 = vcmp.gt.f32.partialorder %v1095_v59, 0.0 }
 0x584   : > { %v1988_v26 = vpop.eup %1987  ;;  %v1148_v13 = vmul.f32 1.442695, %v1127_v49  ;;  %v879_v49 = vpop.f32.mrf.mxu0 }
 0x585   : > { %v1042_v24 = vpop.f32.mrf.mxu2  ;;  %v1840_v48 = vadd.f32 -1.0, %v1988_v26 }
 0x586   : > { %v1078_v36 = vadd.f32 %v1042_v24, %v900_v6  ;;  %1989 = vpow2.f32 %v1148_v13 }
 0x587   : > { %v1190_v43 = vsel %vm1110_vm5, %v1094_v12, %v1840_v48 }
 0x588   : > { %v1096_v51 = vadd.f32 %v3024_v27, %v1078_v36  ;;  %1246 = vmatmul.f32.gmra.mxu3 %v1190_v43 }
 0x58a   : > { %v1128_v41 = vmin.f32 %v1096_v51, 0.0  ;;  %vm1112_vm7 = vcmp.gt.f32.partialorder %v1096_v51, 0.0 }
 0x58c   : > { %v1990_v39 = vpop.eup %1989  ;;  %v1150_v0 = vmul.f32 1.442695, %v1128_v41 }
 0x58d   : > { %v1045_v7 = vpop.f32.mrf.mxu2  ;;  %v1841_v38 = vadd.f32 -1.0, %v1990_v39  ;;  %v882_v39 = vpop.f32.mrf.mxu0 }
 0x58e   : > { %v1079_v31 = vadd.f32 %v1045_v7, %v901_v11  ;;  %1991 = vpow2.f32 %v1150_v0 }
 0x58f   : > { %v1191_v34 = vsel %vm1111_vm6, %v1095_v59, %v1841_v38  ;;  %v717_v59 = vpop.f32.mrf.mxu3 }
 0x590   : > { %v1097_v4 = vadd.f32 %v3024_v27, %v1079_v31  ;;  %1249 = vmatmul.f32.gmra.mxu3 %v1191_v34  ;;  %v718_v41 = vadd.f32 %v717_v59, %v2905_v22  ;;  %v1298_v31 = vld [vmem:[%s3372_s1 + $0x198] sm:$0xff]  ;;  %v1297_v22 = vld [vmem:[%s3372_s1 + $0x190] sm:$0xff] }
 0x591   : > { %1299 = vmatpush.msra.mxu1 %v1298_v31  ;;  %v1284_v31 = vld [vmem:[%s3372_s1 + $0x128] sm:$0xff] }
 0x592   : > { %v1129_v35 = vmin.f32 %v1097_v4, 0.0  ;;  %vm1113_vm8 = vcmp.gt.f32.partialorder %v1097_v4, 0.0  ;;  %v905_v37 = vadd.f32 %v879_v49, %v718_v41 }
 0x593   : > { %1300 = vmatpush.msra.mxu1 %v1297_v22 }
 0x594   : > { %v1992_v17 = vpop.eup %1991  ;;  %v1152_v5 = vmul.f32 1.442695, %v1129_v35 }
 0x595   : > { %v1048_v20 = vpop.f32.mrf.mxu2  ;;  %v1842_v60 = vadd.f32 -1.0, %v1992_v17  ;;  %v1296_v17 = vld [vmem:[%s3372_s1 + $0x188] sm:$0xff]  ;;  %v885_v16 = vpop.f32.mrf.mxu0 }
 0x596   : > { %v1080_v12 = vadd.f32 %v1048_v20, %v902_v18  ;;  %1993 = vpow2.f32 %v1152_v5  ;;  %1301 = vmatpush.msra.mxu1 %v1296_v17 }
 0x597   : > { %v1192_v54 = vsel %vm1112_vm7, %v1096_v51, %v1842_v60  ;;  %v720_v44 = vpop.f32.mrf.mxu3  ;;  %v1295_v60 = vld [vmem:[%s3372_s1 + $0x180] sm:$0xff] }
 0x598   : > { %v1098_v52 = vadd.f32 %v3024_v27, %v1080_v12  ;;  %1252 = vmatmul.f32.gmra.mxu3 %v1192_v54  ;;  %v721_v47 = vadd.f32 %v720_v44, %v2921_v28  ;;  %v1294_v12 = vld [vmem:[%s3372_s1 + $0x178] sm:$0xff]  ;;  %1302 = vmatpush.msra.mxu1 %v1295_v60 }
 0x59a   : > { %v1130_v56 = vmin.f32 %v1098_v52, 0.0  ;;  %vm1114_vm9 = vcmp.gt.f32.partialorder %v1098_v52, 0.0  ;;  %v906_v9 = vadd.f32 %v882_v39, %v721_v47  ;;  %1303 = vmatpush.msra.mxu1 %v1294_v12  ;;  %v1286_v39 = vld [vmem:[%s3372_s1 + $0x138] sm:$0xff]  ;;  %v1283_v47 = vld [vmem:[%s3372_s1 + $0x120] sm:$0xff] }
 0x59c   : > { %v1994_v14 = vpop.eup %1993  ;;  %v1154_v53 = vmul.f32 1.442695, %v1130_v56  ;;  %1304 = vmatpush.msra.mxu1 %v1293_v19 }
 0x59d   : > { %v1051_v15 = vpop.f32.mrf.mxu2  ;;  %v1843_v57 = vadd.f32 -1.0, %v1994_v14 }
 0x59e   : > { %v1081_v58 = vadd.f32 %v1051_v15, %v903_v46  ;;  %1995 = vpow2.f32 %v1154_v53  ;;  %v1292_v46 = vld [vmem:[%s3372_s1 + $0x168] sm:$0xff] }
 0x59f   : > { %v1193_v61 = vsel %vm1113_vm8, %v1097_v4, %v1843_v57  ;;  %v723_v18 = vpop.f32.mrf.mxu3  ;;  %v1291_v57 = vld [vmem:[%s3372_s1 + $0x160] sm:$0xff]  ;;  %1305 = vmatpush.msra.mxu1 %v1292_v46 }
 0x5a0   : > { %v1099_v62 = vadd.f32 %v3024_v27, %v1081_v58  ;;  %1255 = vmatmul.f32.gmra.mxu3 %v1193_v61  ;;  %v724_v53 = vadd.f32 %v723_v18, %v2930_v8  ;;  %v1289_v8 = vld [vmem:[%s3372_s1 + $0x150] sm:$0xff] }
 0x5a1   : > { %1306 = vmatpush.msra.mxu1 %v1291_v57 }
 0x5a2   : > { %v1131_v26 = vmin.f32 %v1099_v62, 0.0  ;;  %vm1115_vm10 = vcmp.gt.f32.partialorder %v1099_v62, 0.0  ;;  %v907_v59 = vadd.f32 %v885_v16, %v724_v53 }
 0x5a4   : > { %v1996_v6 = vpop.eup %1995  ;;  %v1156_v13 = vmul.f32 1.442695, %v1131_v26 }
 0x5a5   : > { %v1054_v24 = vpop.f32.mrf.mxu2  ;;  %v1844_v48 = vadd.f32 -1.0, %v1996_v6 }
 0x5a6   : > { %v1082_v36 = vadd.f32 %v1054_v24, %v904_v2  ;;  %1997 = vpow2.f32 %v1156_v13  ;;  %v888_v2 = vpop.f32.mrf.mxu0 }
 0x5a7   : > { %v1194_v43 = vsel %vm1114_vm9, %v1098_v52, %v1844_v48  ;;  %v726_v49 = vpop.f32.mrf.mxu3  ;;  %v1288_v48 = vld [vmem:[%s3372_s1 + $0x148] sm:$0xff] }
 0x5a8   : > { %v1100_v51 = vadd.f32 %v3024_v27, %v1082_v36  ;;  %1258 = vmatmul.f32.gmra.mxu3 %v1194_v43  ;;  %v727_v36 = vadd.f32 %v726_v49, %v2941_v21  ;;  %v1285_v21 = vld [vmem:[%s3372_s1 + $0x130] sm:$0xff] }
 0x5aa   : > { %v1132_v40 = vmin.f32 %v1100_v51, 0.0  ;;  %vm1116_vm11 = vcmp.gt.f32.partialorder %v1100_v51, 0.0  ;;  %v908_v41 = vadd.f32 %v888_v2, %v727_v36 }
 0x5ac   : > { %v1998_v11 = vpop.eup %1997  ;;  %v1158_v0 = vmul.f32 1.442695, %v1132_v40 }
 0x5ad   : > { %v1057_v3 = vpop.f32.mrf.mxu2  ;;  %v1845_v7 = vadd.f32 -1.0, %v1998_v11 }
 0x5ae   : > { %v1083_v38 = vadd.f32 %v1057_v3, %v905_v37  ;;  %1999 = vpow2.f32 %v1158_v0 }
 0x5af   : > { %v1195_v34 = vsel %vm1115_vm10, %v1099_v62, %v1845_v7  ;;  %v1290_v62 = vld [vmem:[%s3372_s1 + $0x158] sm:$0xff]  ;;  %v729_v3 = vpop.f32.mrf.mxu3 }
 0x5b0   : > { %v1101_v4 = vadd.f32 %v3024_v27, %v1083_v38  ;;  %1261 = vmatmul.f32.gmra.mxu3 %v1195_v34  ;;  %1307 = vmatpush.msra.mxu1 %v1290_v62  ;;  %v891_v34 = vpop.f32.mrf.mxu0 }
 0x5b2   : > { %v1133_v35 = vmin.f32 %v1101_v4, 0.0  ;;  %vm1117_vm12 = vcmp.gt.f32.partialorder %v1101_v4, 0.0  ;;  %1308 = vmatpush.msra.mxu1 %v1289_v8 }
 0x5b4   : > { %v2000_v5 = vpop.eup %1999  ;;  %v1160_v20 = vmul.f32 1.442695, %v1133_v35  ;;  %1309 = vmatpush.msra.mxu1 %v1288_v48 }
 0x5b5   : > { %v1060_v28 = vpop.f32.mrf.mxu2  ;;  %v1846_v54 = vadd.f32 -1.0, %v2000_v5 }
 0x5b6   : > { %v1084_v52 = vadd.f32 %v1060_v28, %v906_v9  ;;  %2001 = vpow2.f32 %v1160_v20 }
 0x5b7   : > { %v1196_v56 = vsel %vm1116_vm11, %v1100_v51, %v1846_v54  ;;  %v1287_v51 = vld [vmem:[%s3372_s1 + $0x140] sm:$0xff] }
 0x5b8   : > { %v1102_v14 = vadd.f32 %v3024_v27, %v1084_v52  ;;  %1264 = vmatmul.f32.gmra.mxu3 %v1196_v56  ;;  %1310 = vmatpush.msra.mxu1 %v1287_v51 }
 0x5ba   : > { %v1134_v15 = vmin.f32 %v1102_v14, 0.0  ;;  %vm1118_vm13 = vcmp.gt.f32.partialorder %v1102_v14, 0.0  ;;  %1311 = vmatpush.msra.mxu1 %v1286_v39 }
 0x5bc   : > { %v2002_v58 = vpop.eup %2001  ;;  %v1162_v61 = vmul.f32 1.442695, %v1134_v15  ;;  %1312 = vmatpush.msra.mxu1 %v1285_v21 }
 0x5bd   : > { %v1063_v45 = vpop.f32.mrf.mxu2  ;;  %v1847_v26 = vadd.f32 -1.0, %v2002_v58 }
 0x5be   : > { %v1085_v6 = vadd.f32 %v1063_v45, %v907_v59  ;;  %2003 = vpow2.f32 %v1162_v61  ;;  %1313 = vmatpush.msra.mxu1 %v1284_v31 }
 0x5bf   : > { %v1197_v13 = vsel %vm1117_vm12, %v1101_v4, %v1847_v26  ;;  %v730_v4 = vadd.f32 %v729_v3, %v2955_v1 }
 0x5c0   : > { %v1103_v24 = vadd.f32 %v3024_v27, %v1085_v6  ;;  %1267 = vmatmul.f32.gmra.mxu3 %v1197_v13  ;;  %1314 = vmatpush.msra.mxu1 %v1283_v47  ;;  %v2063_v47 = vld [vmem:[%s3372_s1 + $0x340] sm:$0xff] }
 0x5c1   : > { %v909_v17 = vadd.f32 %v891_v34, %v730_v4  ;;  %v2062_v4 = vld [vmem:[%s3372_s1 + $0x338] sm:$0xff] }
 0x5c2   : > { %v1135_v43 = vmin.f32 %v1103_v24, 0.0  ;;  %vm1119_vm14 = vcmp.gt.f32.partialorder %v1103_v24, 0.0 }
 0x5c4   : > { %v2004_v44 = vpop.eup %2003  ;;  %v1164_v40 = vmul.f32 1.442695, %v1135_v43 }
 0x5c5   : > { %v1066_v11 = vpop.f32.mrf.mxu2  ;;  %v1848_v37 = vadd.f32 -1.0, %v2004_v44 }
 0x5c6   : > { %v1086_v0 = vadd.f32 %v1066_v11, %v908_v41  ;;  %2005 = vpow2.f32 %v1164_v40 }
 0x5c7   : > { %v1198_v7 = vsel %vm1118_vm13, %v1102_v14, %v1848_v37 }
 0x5c8   : > { %v1104_v38 = vadd.f32 %v3024_v27, %v1086_v0  ;;  %1270 = vmatmul.f32.gmra.mxu3 %v1198_v7 }
 0x5ca   : > { %v1136_v22 = vmin.f32 %v1104_v38, 0.0  ;;  %vm1120_vm15 = vcmp.gt.f32.partialorder %v1104_v38, 0.0 }
 0x5cc   : > { %v2006_v35 = vpop.eup %2005  ;;  %v1166_v18 = vmul.f32 1.442695, %v1136_v22 }
 0x5cd   : > { %v1069_v5 = vpop.f32.mrf.mxu2  ;;  %v1849_v9 = vadd.f32 -1.0, %v2006_v35 }
 0x5ce   : > { %v1087_v20 = vadd.f32 %v1069_v5, %v909_v17  ;;  %2007 = vpow2.f32 %v1166_v18 }
 0x5cf   : > { %v1199_v60 = vsel %vm1119_vm14, %v1103_v24, %v1849_v9 }
 0x5d0   : > { %v1105_v12 = vadd.f32 %v3024_v27, %v1087_v20  ;;  %1273 = vmatmul.f32.gmra.mxu3 %v1199_v60 }
 0x5d2   : > { %v1137_v1 = vmin.f32 %v1105_v12, 0.0  ;;  %vm1121_vm0 = vcmp.gt.f32.partialorder %v1105_v12, 0.0 }
 0x5d4   : > { %v2008_v16 = vpop.eup %2007  ;;  %v1168_v28 = vmul.f32 1.442695, %v1137_v1 }
 0x5d5   : > { %v1850_v54 = vadd.f32 -1.0, %v2008_v16 }
 0x5d6   : > { %2009 = vpow2.f32 %v1168_v28 }
 0x5d7   : > { %v1200_v52 = vsel %vm1120_vm15, %v1104_v38, %v1850_v54 }
 0x5d8   : > { %1276 = vmatmul.f32.gmra.mxu3 %v1200_v52 }
 0x5dc   : > { %v2010_v19 = vpop.eup %2009 }
 0x5dd   : > { %v1851_v56 = vadd.f32 -1.0, %v2010_v19 }
 0x5df   : > { %v1201_v14 = vsel %vm1121_vm0, %v1105_v12, %v1851_v56 }
 0x5e0   : > { %1279 = vmatmul.f32.gmra.mxu3 %v1201_v14 }
 0x5eb   : > { %v1235_v46 = vpop.f32.mrf.mxu3 }
 0x5ec   : > { %1315 = vmatmul.f32.vlgmr.msra.gmra.mxu1 %v1235_v46 }
 0x5f3   : > { %v1238_v53 = vpop.f32.mrf.mxu3 }
 0x5f4   : > { %1318 = vmatmul.f32.gmra.mxu1 %v1238_v53 }
 0x5fb   : > { %v1241_v15 = vpop.f32.mrf.mxu3 }
 0x5fc   : > { %1321 = vmatmul.f32.gmra.mxu1 %v1241_v15 }
 0x603   : > { %v1244_v27 = vpop.f32.mrf.mxu3 }
 0x604   : > { %1324 = vmatmul.f32.gmra.mxu1 %v1244_v27 }
 0x60b   : > { %v1247_v57 = vpop.f32.mrf.mxu3 }
 0x60c   : > { %1327 = vmatmul.f32.gmra.mxu1 %v1247_v57 }
 0x613   : > { %v1250_v58 = vpop.f32.mrf.mxu3 }
 0x614   : > { %1330 = vmatmul.f32.gmra.mxu1 %v1250_v58 }
 0x61b   : > { %v1253_v59 = vpop.f32.mrf.mxu3 }
 0x61c   : > { %1333 = vmatmul.f32.gmra.mxu1 %v1253_v59 }
 0x623   : > { %v1256_v61 = vpop.f32.mrf.mxu3 }
 0x624   : > { %1336 = vmatmul.f32.gmra.mxu1 %v1256_v61 }
 0x62b   : > { %v1259_v62 = vpop.f32.mrf.mxu3 }
 0x62c   : > { %1339 = vmatmul.f32.gmra.mxu1 %v1259_v62 }
 0x633   : > { %v1262_v49 = vpop.f32.mrf.mxu3 }
 0x634   : > { %1342 = vmatmul.f32.gmra.mxu1 %v1262_v49 }
 0x63b   : > { %v1265_v45 = vpop.f32.mrf.mxu3 }
 0x63c   : > { %1345 = vmatmul.f32.gmra.mxu1 %v1265_v45 }
 0x643   : > { %v1268_v26 = vpop.f32.mrf.mxu3 }
 0x644   : > { %1348 = vmatmul.f32.gmra.mxu1 %v1268_v26 }
 0x64b   : > { %v1271_v6 = vpop.f32.mrf.mxu3 }
 0x64c   : > { %1351 = vmatmul.f32.gmra.mxu1 %v1271_v6 }
 0x653   : > { %v1274_v8 = vpop.f32.mrf.mxu3 }
 0x654   : > { %1354 = vmatmul.f32.gmra.mxu1 %v1274_v8 }
 0x65b   : > { %v1277_v2 = vpop.f32.mrf.mxu3 }
 0x65c   : > { %1357 = vmatmul.f32.gmra.mxu1 %v1277_v2 }
 0x663   : > { %v1280_v13 = vpop.f32.mrf.mxu3 }
 0x664   : > { %1360 = vmatmul.f32.gmra.mxu1 %v1280_v13  ;;  %1478 = vmatpush.msra.mxu2 %v1280_v13 }
 0x666   : > { %1479 = vmatpush.msra.mxu2 %v1277_v2  ;;  %v2068_v2 = vld [vmem:[%s3372_s1 + $0x2d8] sm:$0xff] }
 0x668   : > { %1480 = vmatpush.msra.mxu2 %v1274_v8 }
 0x669   : > { %v1316_v24 = vpop.f32.mrf.mxu1 }
 0x66a   : > { %1364 = vxpose.xlu1.b32.start [1/16] (narrow) %v1316_v24, 8  ;;  %1481 = vmatpush.msra.mxu2 %v1271_v6  ;;  %v2067_v6 = vld [vmem:[%s3372_s1 + $0x2d0] sm:$0xff] }
 0x66c   : > { %1482 = vmatpush.msra.mxu2 %v1268_v26 }
 0x66e   : > { %1483 = vmatpush.msra.mxu2 %v1265_v45  ;;  %v2066_v45 = vld [vmem:[%s3372_s1 + $0x2c8] sm:$0xff] }
 0x670   : > { %1484 = vmatpush.msra.mxu2 %v1262_v49 }
 0x671   : > { %v1319_v48 = vpop.f32.mrf.mxu1 }
 0x672   : > { %1365 = vxpose.xlu1.b32.cont [2/16] (narrow) %v1319_v48, 8  ;;  %1485 = vmatpush.msra.mxu2 %v1259_v62  ;;  %v2065_v62 = vld [vmem:[%s3372_s1 + $0x2c0] sm:$0xff] }
 0x674   : > { %1486 = vmatpush.msra.mxu2 %v1256_v61 }
 0x676   : > { %1487 = vmatpush.msra.mxu2 %v1253_v59 }
 0x678   : > { %1488 = vmatpush.msra.mxu2 %v1250_v58 }
 0x679   : > { %v1322_v36 = vpop.f32.mrf.mxu1 }
 0x67a   : > { %1366 = vxpose.xlu1.b32.cont [3/16] (narrow) %v1322_v36, 8  ;;  %1489 = vmatpush.msra.mxu2 %v1247_v57  ;;  %v2064_v57 = vld [vmem:[%s3372_s1 + $0x2b8] sm:$0xff] }
 0x67c   : > { %1490 = vmatpush.msra.mxu2 %v1244_v27 }
 0x67e   : > { %1491 = vmatpush.msra.mxu2 %v1241_v15 }
 0x680   : > { %1492 = vmatpush.msra.mxu2 %v1238_v53 }
 0x681   : > { %v1325_v43 = vpop.f32.mrf.mxu1 }
 0x682   : > { %1367 = vxpose.xlu1.b32.cont [4/16] (narrow) %v1325_v43, 8  ;;  %1493 = vmatpush.msra.mxu2 %v1235_v46 }
 0x689   : > { %v1328_v51 = vpop.f32.mrf.mxu1 }
 0x68a   : > { %1368 = vxpose.xlu1.b32.cont [5/16] (narrow) %v1328_v51, 8 }
 0x691   : > { %v1331_v44 = vpop.f32.mrf.mxu1 }
 0x692   : > { %1369 = vxpose.xlu1.b32.cont [6/16] (narrow) %v1331_v44, 8 }
 0x699   : > { %v1334_v41 = vpop.f32.mrf.mxu1 }
 0x69a   : > { %1370 = vxpose.xlu1.b32.cont [7/16] (narrow) %v1334_v41, 8 }
 0x6a1   : > { %v1337_v40 = vpop.f32.mrf.mxu1 }
 0x6a2   : > { %1371 = vxpose.xlu1.b32.cont [8/16] (narrow) %v1337_v40, 8 }
 0x6a9   : > { %v1340_v39 = vpop.f32.mrf.mxu1 }
 0x6aa   : > { %1372 = vxpose.xlu1.b32.cont [9/16] (narrow) %v1340_v39, 8 }
 0x6b1   : > { %v1343_v11 = vpop.f32.mrf.mxu1 }
 0x6b2   : > { %1373 = vxpose.xlu1.b32.cont [10/16] (narrow) %v1343_v11, 8 }
 0x6b9   : > { %v1346_v37 = vpop.f32.mrf.mxu1 }
 0x6ba   : > { %1374 = vxpose.xlu1.b32.cont [11/16] (narrow) %v1346_v37, 8 }
 0x6c1   : > { %v1349_v0 = vpop.f32.mrf.mxu1 }
 0x6c2   : > { %1375 = vxpose.xlu1.b32.cont [12/16] (narrow) %v1349_v0, 8 }
 0x6c9   : > { %v1352_v21 = vpop.f32.mrf.mxu1 }
 0x6ca   : > { %1376 = vxpose.xlu1.b32.cont [13/16] (narrow) %v1352_v21, 8 }
 0x6d1   : > { %v1355_v3 = vpop.f32.mrf.mxu1 }
 0x6d2   : > { %1377 = vxpose.xlu1.b32.cont [14/16] (narrow) %v1355_v3, 8 }
 0x6d9   : > { %v1358_v7 = vpop.f32.mrf.mxu1 }
 0x6da   : > { %1378 = vxpose.xlu1.b32.cont [15/16] (narrow) %v1358_v7, 8 }
 0x6e1   : > { %v1361_v38 = vpop.f32.mrf.mxu1 }
 0x6e2   : > { %1379 = vxpose.xlu1.b32.end [16/16] (narrow) %v1361_v38, 8 }
 0x70e   : > { %v1380_v31 = vpop.trf.xlu1 }
 0x70f   : > { %v1396_v34 = vperm.slane %v1380_v31, 1  ;;  %v1399_v17 = vperm.slane %v1380_v31, 0 }
 0x711   : > { %v1397_v22 = vmul.f32 %v2062_v4, %v1396_v34  ;;  %v1398_v35 = vmul.f32 %v2063_v47, %v1396_v34 }
 0x713   : > { %1416 = vmatmul.f32.vlgmr.msra.gmra.mxu0 %v1397_v22 }
 0x71b   : > { %1419 = vmatmul.f32.gmra.mxu0 %v1398_v35 }
 0x790   : > { %v1417_v18 = vpop.f32.mrf.mxu0 }
 0x791   : > { %v1418_v5 = vadd.f32 %v1417_v18, %v1399_v17 }
 0x793   : > { %v1423_v9 = vmul.f32 0.2, %v1418_v5 }
 0x795   : > { %v1425_v20 = vmax.f32 %v1418_v5, %v1423_v9 }
 0x797   : > { %v1427_v60 = vmin.f32 %v1425_v20, 30.0 }
 0x798   : > { %v1420_v12 = vpop.f32.mrf.mxu0 }
 0x799   : > { %v1429_v1 = vmul.f32 1.442695, %v1427_v60  ;;  %v1421_v16 = vadd.f32 %v1420_v12, %v1399_v17 }
 0x79b   : > { %2011 = vpow2.f32 %v1429_v1  ;;  %v1424_v28 = vmul.f32 0.2, %v1421_v16 }
 0x79d   : > { %v1426_v54 = vmax.f32 %v1421_v16, %v1424_v28 }
 0x79f   : > { %v1428_v52 = vmin.f32 %v1426_v54, 30.0 }
 0x7a1   : > { %v2012_v19 = vpop.eup %2011  ;;  %v1431_v56 = vmul.f32 1.442695, %v1428_v52 }
 0x7a2   : > { %1449 = vmatmul.f32.vlgmr.msrb.gmra.mxu0 %v2012_v19 }
 0x7a3   : > { %2013 = vpow2.f32 %v1431_v56 }
 0x7a9   : > { %v2014_v14 = vpop.eup %2013 }
 0x7aa   : > { %1452 = vmatmul.f32.gmra.mxu0 %v2014_v14 }
 0x81f   : > { %v1450_v46 = vpop.f32.mrf.mxu0 }
 0x820   : > { %2015 = vrcp.f32 %v1450_v46 }
 0x826   : > { %v2016_v53 = vpop.eup %2015 }
 0x827   : > { %v1458_v15 = vmul.f32 %v2016_v53, %v2012_v19  ;;  %v1453_v27 = vpop.f32.mrf.mxu0 }
 0x828   : > { %2017 = vrcp.f32 %v1453_v27 }
 0x829   : > { %v1460_v58 = vmul.f32 %v2064_v57, %v1458_v15  ;;  %v1462_v26 = vmul.f32 %v2066_v45, %v1458_v15  ;;  %v1464_v13 = vmul.f32 %v2068_v2, %v1458_v15  ;;  %v1466_v48 = vmul.f32 %v2910_v29, %v1458_v15 }
 0x82a   : > { %v1468_v43 = vmul.f32 %v2926_v33, %v1458_v15  ;;  %v1470_v44 = vmul.f32 %v2946_v55, %v1458_v15 }
 0x82b   : > { %1494 = vmatmul.f32.vlgmr.msra.gmra.mxu2 %v1460_v58 }
 0x82e   : > { %v2018_v59 = vpop.eup %2017 }
 0x82f   : > { %v1459_v61 = vmul.f32 %v2018_v59, %v2014_v14 }
 0x831   : > { %v1461_v49 = vmul.f32 %v2065_v62, %v1459_v61  ;;  %v1463_v8 = vmul.f32 %v2067_v6, %v1459_v61  ;;  %v1465_v24 = vmul.f32 %v2901_v32, %v1459_v61  ;;  %v1467_v36 = vmul.f32 %v2917_v30, %v1459_v61 }
 0x832   : > { %v1469_v51 = vmul.f32 %v2935_v10, %v1459_v61  ;;  %v1471_v41 = vmul.f32 %v2852_v25, %v1459_v61  ;;  %v1472_v32 = vmul.f32 %v2859_v23, %v1458_v15  ;;  %v1473_v29 = vmul.f32 %v2866_v50, %v1459_v61 }
 0x833   : > { %1497 = vmatmul.f32.gmra.mxu2 %v1461_v49  ;;  %v1474_v30 = vmul.f32 %v2873_v42, %v1458_v15  ;;  %v1475_v33 = vmul.f32 %v2880_v63, %v1459_v61  ;;  %v3144_v63 = vld [vmem:[%s3372_s1 + $0x118] ss:$0 sm:$0xff] }
 0x83b   : > { %1500 = vmatmul.f32.gmra.mxu2 %v1462_v26 }
 0x843   : > { %1503 = vmatmul.f32.gmra.mxu2 %v1463_v8 }
 0x84b   : > { %1506 = vmatmul.f32.gmra.mxu2 %v1464_v13 }
 0x853   : > { %1509 = vmatmul.f32.gmra.mxu2 %v1465_v24 }
 0x85b   : > { %1512 = vmatmul.f32.gmra.mxu2 %v1466_v48 }
 0x863   : > { %1515 = vmatmul.f32.gmra.mxu2 %v1467_v36 }
 0x86b   : > { %1518 = vmatmul.f32.gmra.mxu2 %v1468_v43 }
 0x873   : > { %1521 = vmatmul.f32.gmra.mxu2 %v1469_v51 }
 0x87b   : > { %1524 = vmatmul.f32.gmra.mxu2 %v1470_v44 }
 0x883   : > { %1527 = vmatmul.f32.gmra.mxu2 %v1471_v41  ;;  %v1675_v41 = vld [vmem:[%s3372_s1 + $0x218] sm:$0xff] }
 0x884   : > { %1678 = vmatpush.msra.mxu0 %v1675_v41 }
 0x88b   : > { %1530 = vmatmul.f32.gmra.mxu2 %v1472_v32  ;;  %v1674_v32 = vld [vmem:[%s3372_s1 + $0x210] sm:$0xff] }
 0x88c   : > { %1679 = vmatpush.msra.mxu0 %v1674_v32 }
 0x893   : > { %1533 = vmatmul.f32.gmra.mxu2 %v1473_v29 }
 0x89b   : > { %1536 = vmatmul.f32.gmra.mxu2 %v1474_v30 }
 0x8a3   : > { %1539 = vmatmul.f32.gmra.mxu2 %v1475_v33 }
 0x8ae   : > { %v3137_v10 = vpop.f32.mrf.mxu2 }
 0x8b6   : > { %v3139_v40 = vpop.f32.mrf.mxu2 }
 0x8be   : > { %v1501_v55 = vpop.f32.mrf.mxu2 }
 0x8bf   : > { %v3191_v43 = vadd.f32 %v3144_v63, %v1501_v55  ;;  %v3202_v55 = vadd.f32 %v3144_v63, %v3139_v40 }
 0x8c1   : > { %vm1545_vm14 = vcmp.gt.f32.partialorder %v3191_v43, 0.0  ;;  %vm1544_vm15 = vcmp.gt.f32.partialorder %v3202_v55, 0.0 }
 0x8c6   : > { %v1504_v39 = vpop.f32.mrf.mxu2 }
 0x8c7   : > { %v3187_v8 = vadd.f32 %v3144_v63, %v1504_v39 }
 0x8c9   : > { %vm1546_vm13 = vcmp.gt.f32.partialorder %v3187_v8, 0.0 }
 0x8ce   : > { %v1507_v25 = vpop.f32.mrf.mxu2 }
 0x8cf   : > { %v3183_v45 = vadd.f32 %v3144_v63, %v1507_v25 }
 0x8d1   : > { %v1563_v30 = vmin.f32 %v3183_v45, 0.0  ;;  %vm1547_vm12 = vcmp.gt.f32.partialorder %v3183_v45, 0.0 }
 0x8d6   : > { %v1510_v11 = vpop.f32.mrf.mxu2 }
 0x8d7   : > { %v3179_v58 = vadd.f32 %v3144_v63, %v1510_v11  ;;  %v1673_v11 = vld [vmem:[%s3372_s1 + $0x208] sm:$0xff] }
 0x8d8   : > { %1680 = vmatpush.msra.mxu0 %v1673_v11  ;;  %v1713_v11 = vld [vmem:[%s3372_s1 + $0x298] sm:$0xff] }
 0x8d9   : > { %v1564_v48 = vmin.f32 %v3179_v58, 0.0  ;;  %vm1548_vm11 = vcmp.gt.f32.partialorder %v3179_v58, 0.0 }
 0x8de   : > { %v1513_v37 = vpop.f32.mrf.mxu2 }
 0x8df   : > { %v3175_v53 = vadd.f32 %v3144_v63, %v1513_v37 }
 0x8e1   : > { %v1565_v26 = vmin.f32 %v3175_v53, 0.0  ;;  %vm1549_vm10 = vcmp.gt.f32.partialorder %v3175_v53, 0.0 }
 0x8e3   : > { %v1587_v33 = vmul.f32 1.442695, %v1565_v26 }
 0x8e6   : > { %v1516_v23 = vpop.f32.mrf.mxu2 }
 0x8e7   : > { %v3171_v56 = vadd.f32 %v3144_v63, %v1516_v23  ;;  %v1562_v23 = vmin.f32 %v3187_v8, 0.0 }
 0x8e9   : > { %v1566_v59 = vmin.f32 %v3171_v56, 0.0  ;;  %vm1550_vm9 = vcmp.gt.f32.partialorder %v3171_v56, 0.0 }
 0x8eb   : > { %v1589_v36 = vmul.f32 1.442695, %v1566_v59  ;;  %v1667_v59 = vld [vmem:[%s3372_s1 + $0x1d8] sm:$0xff] }
 0x8ee   : > { %v1519_v0 = vpop.f32.mrf.mxu2 }
 0x8ef   : > { %v3167_v28 = vadd.f32 %v3144_v63, %v1519_v0  ;;  %v1585_v0 = vmul.f32 1.442695, %v1564_v48  ;;  %v1664_v48 = vld [vmem:[%s3372_s1 + $0x1c0] sm:$0xff] }
 0x8f1   : > { %v1567_v15 = vmin.f32 %v3167_v28, 0.0  ;;  %vm1551_vm8 = vcmp.gt.f32.partialorder %v3167_v28, 0.0 }
 0x8f3   : > { %v1591_v6 = vmul.f32 1.442695, %v1567_v15 }
 0x8f6   : > { %v1522_v21 = vpop.f32.mrf.mxu2 }
 0x8f7   : > { %v3163_v12 = vadd.f32 %v3144_v63, %v1522_v21  ;;  %v3211_v21 = vadd.f32 %v3144_v63, %v3137_v10 }
 0x8f9   : > { %v1568_v14 = vmin.f32 %v3163_v12, 0.0  ;;  %vm1552_vm7 = vcmp.gt.f32.partialorder %v3163_v12, 0.0  ;;  %vm1543_vm0 = vcmp.gt.f32.partialorder %v3211_v21, 0.0 }
 0x8fb   : > { %v1593_v61 = vmul.f32 1.442695, %v1568_v14 }
 0x8fe   : > { %v1525_v50 = vpop.f32.mrf.mxu2 }
 0x8ff   : > { %v3158_v18 = vadd.f32 %v3144_v63, %v1525_v50 }
 0x901   : > { %v1569_v54 = vmin.f32 %v3158_v18, 0.0  ;;  %vm1553_vm6 = vcmp.gt.f32.partialorder %v3158_v18, 0.0 }
 0x903   : > { %v1595_v27 = vmul.f32 1.442695, %v1569_v54 }
 0x906   : > { %v1528_v3 = vpop.f32.mrf.mxu2 }
 0x907   : > { %v3155_v35 = vadd.f32 %v3144_v63, %v1528_v3  ;;  %v1672_v3 = vld [vmem:[%s3372_s1 + $0x200] sm:$0xff] }
 0x908   : > { %1681 = vmatpush.msra.mxu0 %v1672_v3  ;;  %v1706_v3 = vld [vmem:[%s3372_s1 + $0x260] sm:$0xff] }
 0x909   : > { %v1570_v1 = vmin.f32 %v3155_v35, 0.0  ;;  %vm1554_vm5 = vcmp.gt.f32.partialorder %v3155_v35, 0.0 }
 0x90b   : > { %v1597_v46 = vmul.f32 1.442695, %v1570_v1 }
 0x90e   : > { %v1531_v7 = vpop.f32.mrf.mxu2 }
 0x90f   : > { %v3151_v4 = vadd.f32 %v3144_v63, %v1531_v7 }
 0x911   : > { %v1571_v5 = vmin.f32 %v3151_v4, 0.0  ;;  %vm1555_vm4 = vcmp.gt.f32.partialorder %v3151_v4, 0.0 }
 0x913   : > { %v1599_v52 = vmul.f32 1.442695, %v1571_v5 }
 0x916   : > { %v1534_v42 = vpop.f32.mrf.mxu2 }
 0x917   : > { %v3148_v34 = vadd.f32 %v3144_v63, %v1534_v42  ;;  %v1561_v42 = vmin.f32 %v3191_v43, 0.0 }
 0x919   : > { %v1572_v47 = vmin.f32 %v3148_v34, 0.0  ;;  %vm1556_vm3 = vcmp.gt.f32.partialorder %v3148_v34, 0.0 }
 0x91b   : > { %v1601_v60 = vmul.f32 1.442695, %v1572_v47  ;;  %v1581_v47 = vmul.f32 1.442695, %v1562_v23  ;;  %v1711_v23 = vld [vmem:[%s3372_s1 + $0x288] sm:$0xff] }
 0x91e   : > { %v1537_v38 = vpop.f32.mrf.mxu2 }
 0x91f   : > { %v1538_v31 = vadd.f32 %v3144_v63, %v1537_v38  ;;  %v1583_v38 = vmul.f32 1.442695, %v1563_v30 }
 0x921   : > { %v1573_v22 = vmin.f32 %v1538_v31, 0.0  ;;  %vm1557_vm2 = vcmp.gt.f32.partialorder %v1538_v31, 0.0 }
 0x923   : > { %v1603_v9 = vmul.f32 1.442695, %v1573_v22  ;;  %v1560_v22 = vmin.f32 %v3202_v55, 0.0 }
 0x925   : > { %2019 = vpow2.f32 %v1603_v9 }
 0x926   : > { %v1540_v17 = vpop.f32.mrf.mxu2  ;;  %2021 = vpow2.f32 %v1601_v60  ;;  %v1579_v60 = vmul.f32 1.442695, %v1561_v42  ;;  %v1704_v42 = vld [vmem:[%s3372_s1 + $0x250] sm:$0xff] }
 0x927   : > { %v1541_v20 = vadd.f32 %v3144_v63, %v1540_v17  ;;  %v1671_v63 = vld [vmem:[%s3372_s1 + $0x1f8] sm:$0xff] }
 0x928   : > { %1682 = vmatpush.msra.mxu0 %v1671_v63  ;;  %v1700_v63 = vld [vmem:[%s3372_s1 + $0x230] sm:$0xff] }
 0x929   : > { %v1574_v16 = vmin.f32 %v1541_v20, 0.0  ;;  %vm1558_vm1 = vcmp.gt.f32.partialorder %v1541_v20, 0.0 }
 0x92b   : > { %v1605_v19 = vmul.f32 1.442695, %v1574_v16  ;;  %v2020_v57 = vpop.eup %2019 }
 0x92c   : > { %v2022_v62 = vpop.eup %2021  ;;  %v1866_v13 = vadd.f32 -1.0, %v2020_v57 }
 0x92d   : > { %2023 = vpow2.f32 %v1605_v19  ;;  %v1865_v44 = vadd.f32 -1.0, %v2022_v62 }
 0x92e   : > { %2025 = vpow2.f32 %v1599_v52  ;;  %v1637_v39 = vsel %vm1557_vm2, %v1538_v31, %v1866_v13  ;;  %v1577_v52 = vmul.f32 1.442695, %v1560_v22 }
 0x92f   : > { %2027 = vpow2.f32 %v1597_v46  ;;  %v1636_v40 = vsel %vm1556_vm3, %v3148_v34, %v1865_v44  ;;  %v1668_v46 = vld [vmem:[%s3372_s1 + $0x1e0] sm:$0xff]  ;;  %v1663_v44 = vld [vmem:[%s3372_s1 + $0x1b8] sm:$0xff] }
 0x930   : > { %2029 = vpow2.f32 %v1595_v27 }
 0x931   : > { %2031 = vpow2.f32 %v1593_v61 }
 0x932   : > { %2033 = vpow2.f32 %v1591_v6 }
 0x933   : > { %v2024_v49 = vpop.eup %2023  ;;  %2035 = vpow2.f32 %v1589_v36 }
 0x934   : > { %v1867_v2 = vadd.f32 -1.0, %v2024_v49  ;;  %v2026_v24 = vpop.eup %2025  ;;  %2037 = vpow2.f32 %v1587_v33  ;;  %v1666_v49 = vld [vmem:[%s3372_s1 + $0x1d0] sm:$0xff]  ;;  %v1661_v33 = vld [vmem:[%s3372_s1 + $0x1a8] sm:$0xff] }
 0x935   : > { %v2028_v29 = vpop.eup %2027  ;;  %v1864_v25 = vadd.f32 -1.0, %v2026_v24  ;;  %2039 = vpow2.f32 %v1585_v0  ;;  %v1710_v0 = vld [vmem:[%s3372_s1 + $0x280] sm:$0xff] }
 0x936   : > { %v1638_v51 = vsel %vm1558_vm1, %v1541_v20, %v1867_v2  ;;  %v2030_v37 = vpop.eup %2029  ;;  %v1863_v50 = vadd.f32 -1.0, %v2028_v29  ;;  %v1559_v20 = vmin.f32 %v3211_v21, 0.0  ;;  %2041 = vpow2.f32 %v1583_v38  ;;  %v1665_v2 = vld [vmem:[%s3372_s1 + $0x1c8] sm:$0xff]  ;;  %v1662_v29 = vld [vmem:[%s3372_s1 + $0x1b0] sm:$0xff] }
 0x937   : > { %1640 = vmatpush.msrb.mxu3 %v1638_v51  ;;  %v2032_v7 = vpop.eup %2031  ;;  %v1635_v31 = vsel %vm1555_vm4, %v3151_v4, %v1864_v25  ;;  %v1862_v10 = vadd.f32 -1.0, %v2030_v37  ;;  %v1670_v4 = vld [vmem:[%s3372_s1 + $0x1f0] sm:$0xff]  ;;  %2043 = vpow2.f32 %v1581_v47  ;;  %v1660_v25 = vld [vmem:[%s3372_s1 + $0x1a0] sm:$0xff]  ;;  %v1703_v38 = vld [vmem:[%s3372_s1 + $0x248] sm:$0xff] }
 0x938   : > { %v2034_v34 = vpop.eup %2033  ;;  %v1634_v17 = vsel %vm1554_vm5, %v3155_v35, %v1863_v50  ;;  %v1861_v5 = vadd.f32 -1.0, %v2032_v7  ;;  %v1669_v35 = vld [vmem:[%s3372_s1 + $0x1e8] sm:$0xff]  ;;  %1683 = vmatpush.msra.mxu0 %v1670_v4  ;;  %v1575_v15 = vmul.f32 1.442695, %v1559_v20  ;;  %2045 = vpow2.f32 %v1579_v60  ;;  %v1712_v37 = vld [vmem:[%s3372_s1 + $0x290] sm:$0xff]  ;;  %v1705_v7 = vld [vmem:[%s3372_s1 + $0x258] sm:$0xff] }
 0x939   : > { %1641 = vmatpush.msrb.mxu3 %v1637_v39  ;;  %v2036_v9 = vpop.eup %2035  ;;  %v1633_v1 = vsel %vm1553_vm6, %v3158_v18, %v1862_v10  ;;  %v1860_v16 = vadd.f32 -1.0, %v2034_v34  ;;  %2047 = vpow2.f32 %v1577_v52  ;;  %v1639_v39 = vld [vmem:[%s3372_s1 + $0x348] sm:$0xff]  ;;  %v1701_v10 = vld [vmem:[%s3372_s1 + $0x238] sm:$0xff]  ;;  %v1945_v47 = vld [vmem:[%s3372_s1 + $0x220] ss:$0 sm:$0xff] }
 0x93a   : > { %v2038_v54 = vpop.eup %2037  ;;  %v1632_v19 = vsel %vm1552_vm7, %v3163_v12, %v1861_v5  ;;  %v1859_v14 = vadd.f32 -1.0, %v2036_v9  ;;  %1684 = vmatpush.msra.mxu0 %v1669_v35  ;;  %2049 = vpow2.f32 %v1575_v15  ;;  %v1707_v50 = vld [vmem:[%s3372_s1 + $0x268] sm:$0xff] }
 0x93b   : > { %1642 = vmatpush.msrb.mxu3 %v1636_v40  ;;  %v2040_v18 = vpop.eup %2039  ;;  %v1631_v27 = vsel %vm1551_vm8, %v3167_v28, %v1860_v16  ;;  %v1858_v57 = vadd.f32 -1.0, %v2038_v54  ;;  %v1708_v40 = vld [vmem:[%s3372_s1 + $0x270] sm:$0xff]  ;;  %v1699_v34 = vld [vmem:[%s3372_s1 + $0x228] sm:$0xff] }
 0x93c   : > { %v2042_v12 = vpop.eup %2041  ;;  %1685 = vmatpush.msra.mxu0 %v1668_v46  ;;  %v1630_v61 = vsel %vm1550_vm9, %v3171_v56, %v1859_v14  ;;  %v1857_v62 = vadd.f32 -1.0, %v2040_v18  ;;  %v1946_v9 = vld [vmem:[%s3372_s1 + $0x2a8] ss:$0 sm:$0xff] }
 0x93d   : > { %1643 = vmatpush.msrb.mxu3 %v1635_v31  ;;  %v2044_v26 = vpop.eup %2043  ;;  %v1629_v28 = vsel %vm1549_vm10, %v3175_v53, %v1858_v57  ;;  %v1856_v6 = vadd.f32 -1.0, %v2042_v12  ;;  %v1702_v31 = vld [vmem:[%s3372_s1 + $0x240] sm:$0xff] }
 0x93e   : > { %1686 = vmatpush.msra.mxu0 %v1667_v59  ;;  %v2046_v13 = vpop.eup %2045  ;;  %v1628_v56 = vsel %vm1548_vm11, %v3179_v58, %v1857_v62  ;;  %v1855_v24 = vadd.f32 -1.0, %v2044_v26 }
 0x93f   : > { %1644 = vmatpush.msrb.mxu3 %v1634_v17  ;;  %v2048_v36 = vpop.eup %2047  ;;  %v1627_v53 = vsel %vm1547_vm12, %v3183_v45, %v1856_v6  ;;  %v1854_v51 = vadd.f32 -1.0, %v2046_v13 }
 0x940   : > { %1687 = vmatpush.msra.mxu0 %v1666_v49  ;;  %v2050_v41 = vpop.eup %2049  ;;  %v1626_v58 = vsel %vm1546_vm13, %v3187_v8, %v1855_v24  ;;  %v1853_v32 = vadd.f32 -1.0, %v2048_v36 }
 0x941   : > { %1645 = vmatpush.msrb.mxu3 %v1633_v1  ;;  %v1625_v45 = vsel %vm1545_vm14, %v3191_v43, %v1854_v51  ;;  %v1852_v30 = vadd.f32 -1.0, %v2050_v41 }
 0x942   : > { %1688 = vmatpush.msra.mxu0 %v1665_v2  ;;  %v1624_v8 = vsel %vm1544_vm15, %v3202_v55, %v1853_v32  ;;  %v1714_v55 = vld [vmem:[%s3372_s1 + $0x2a0] sm:$0xff] }
 0x943   : > { %1646 = vmatpush.msrb.mxu3 %v1632_v19  ;;  %v1623_v43 = vsel %vm1543_vm0, %v3211_v21, %v1852_v30  ;;  %1717 = vmatpush.msrb.mxu1 %v1714_v55  ;;  %v1709_v21 = vld [vmem:[%s3372_s1 + $0x278] sm:$0xff] }
 0x944   : > { %1689 = vmatpush.msra.mxu0 %v1664_v48 }
 0x945   : > { %1647 = vmatpush.msrb.mxu3 %v1631_v27  ;;  %1718 = vmatpush.msrb.mxu1 %v1713_v11 }
 0x946   : > { %1690 = vmatpush.msra.mxu0 %v1663_v44 }
 0x947   : > { %1648 = vmatpush.msrb.mxu3 %v1630_v61  ;;  %1719 = vmatpush.msrb.mxu1 %v1712_v37 }
 0x948   : > { %1691 = vmatpush.msra.mxu0 %v1662_v29 }
 0x949   : > { %1649 = vmatpush.msrb.mxu3 %v1629_v28  ;;  %1720 = vmatpush.msrb.mxu1 %v1711_v23 }
 0x94a   : > { %1692 = vmatpush.msra.mxu0 %v1661_v33 }
 0x94b   : > { %1650 = vmatpush.msrb.mxu3 %v1628_v56  ;;  %1721 = vmatpush.msrb.mxu1 %v1710_v0 }
 0x94c   : > { %1693 = vmatpush.msra.mxu0 %v1660_v25 }
 0x94d   : > { %1651 = vmatpush.msrb.mxu3 %v1627_v53  ;;  %1722 = vmatpush.msrb.mxu1 %v1709_v21 }
 0x94f   : > { %1652 = vmatpush.msrb.mxu3 %v1626_v58  ;;  %1723 = vmatpush.msrb.mxu1 %v1708_v40 }
 0x951   : > { %1653 = vmatpush.msrb.mxu3 %v1625_v45  ;;  %1724 = vmatpush.msrb.mxu1 %v1707_v50 }
 0x953   : > { %1654 = vmatpush.msrb.mxu3 %v1624_v8  ;;  %1725 = vmatpush.msrb.mxu1 %v1706_v3 }
 0x955   : > { %1655 = vmatpush.msrb.mxu3 %v1623_v43  ;;  %1726 = vmatpush.msrb.mxu1 %v1705_v7 }
 0x956   : > { %1656 = vmatmul.f32.vlgmr.msrb.gmra.mxu3 %v1639_v39 }
 0x957   : > { %1727 = vmatpush.msrb.mxu1 %v1704_v42 }
 0x959   : > { %1728 = vmatpush.msrb.mxu1 %v1703_v38 }
 0x95b   : > { %1729 = vmatpush.msrb.mxu1 %v1702_v31 }
 0x95d   : > { %1730 = vmatpush.msrb.mxu1 %v1701_v10 }
 0x95f   : > { %1731 = vmatpush.msrb.mxu1 %v1700_v63 }
 0x961   : > { %1732 = vmatpush.msrb.mxu1 %v1699_v34 }
 0x9d9   : > { %v1657_v22 = vpop.f32.mrf.mxu3 }
 0x9da   : > { %1694 = vmatmul.f32.vlgmr.msra.gmra.mxu0 %v1657_v22 }
 0xa57   : > { %v1695_v17 = vpop.f32.mrf.mxu0 }
 0xa58   : > { %v1696_v5 = vadd.f32 %v1945_v47, %v1695_v17 }
 0xa5a   : > { %v1698_v4 = vmax.f32 %v1696_v5, 0.0 }
 0xa5c   : > { %1733 = vmatmul.f32.vlgmr.msrb.gmra.mxu1 %v1698_v4 }
 0xad9   : > { %v1734_v20 = vpop.f32.mrf.mxu1 }
 0xada   : > { %v1735_v60 = vadd.f32 %v1946_v9, %v1734_v20 }
 0xadc   : > { %1737 = vst [vmem:[%s137_s6] sm:$0xff] %v1735_v60 }
 0xadd   : > { %2096 = shalt.err (!%p2093_p3)
}
 0xade   : > { %1904 = dma.vmem_to_hbm [thread:$0]  (%p2186_p5), %s1752_s7, 128, %s1754_s8, %s1739_s14  }
 0xadf PF: > { %p1910_p4 = scmp.ge.s32.totalorder %s2131_s12, 2  ;;  %s1765_s29 = sand.u32 1, %s2119_s9  }
 0xae0   : > { %s1766_s25 = scalar_lea.sflag [#allocation3], %s1765_s29 }
 0xae1   : > { %p1907_p7 = pnand %p1910_p4, %p2190_p6 }
 0xae3   : > { %p1908_p8 = pneg %p1907_p7 }
 0xae5   : > { %2114 = dma.done.wait (%p1908_p8), %s1766_s25, 128  }
 0xae6   : > { %2116 = vsyncadd (%p1908_p8), %s1766_s25, 4294967168  ;;  %p12_p9 = scmp.ge.s32.totalorder %s2173_s15, 10   ;;  %s3396_s9 = smov %s2123_s10 }
 0xae7   : > { %s3397_s10 = smov %s2127_s11  ;;  %s3398_s11 = smov %s2184_s18 }
 0xae8   : > { %s3399_s12 = smov %s2173_s15  ;;  %14 = sbr.rel (!%p12_p9) target bundleno = 3 (0x3), region = 63 }
 0xaed   :  { %1772 = vsyncpa [#allocation3], 1 }
 0xaee   :  { %1774 = vsyncpa [#allocation3 + $0x1], 1 }

</bundles_post_ra>
